<compile_context>
chip_gen: v5e
topology: v5e:2x2
jax: 0.10.0
libtpu: 0.0.40
codegen_flags: <defaults>
</compile_context>

<pallas_src>
import math
import functools

import jax
import jax.numpy as jnp
from jax.experimental import pallas as pl
from jax.experimental.pallas import tpu as pltpu


MASK_VALUE = -1e30  # finite "minus infinity" (NaN-safe for masks / LSE init)


# ----------------------------- tiling helpers -------------------------------

@functools.lru_cache(maxsize=None)
def _vmem_limit():
    """~48 MiB on v7x (64 MiB physical VMEM), ~96 MiB on v5e/v6e (128 MiB)."""
    try:
        cap = pltpu.get_tpu_info().vmem_capacity_bytes
    except Exception:
        cap = 128 * 1024 * 1024
    return int(min(cap * 3 // 4, 96 * 1024 * 1024))


def _pick_bt(B, S, target_rows=256):
    """Batch-tile size: Bt*S ~ target MXU rows, Bt divides B."""
    bt = max(1, min(B, -(-target_rows // max(S, 1))))
    while B % bt:
        bt -= 1
    return bt


def _pick_tile_s(S, B, target_rows=256):
    """Decoder seq tile: tile_s*B ~ target rows, >=2 grid steps, divides S."""
    ts = max(1, min(S, -(-target_rows // max(B, 1))))
    if ts >= S and S > 1:
        ts = S // 2                      # keep at least 2 grid steps
    while S % ts:
        ts -= 1
    return max(ts, 1)


def _pick_tile_v(V, target=2048):
    """Decoder vocab tile: multiple of 256 dividing V when possible."""
    if V % 256 == 0:
        tv = min(V, target)
        tv -= tv % 256
        while V % tv:
            tv -= 256
        return max(tv, 256)
    return V


def _stacked_spec(arr):
    """BlockSpec for a per-layer-stacked weight: index by the layer grid axis,
    leading (nlayers) dim squeezed out of the kernel ref."""
    rest = arr.shape[1:]
    nrest = len(rest)
    return pl.BlockSpec((None,) + rest,
                        lambda bt, l, _n=nrest: (l,) + (0,) * _n)


# ----------------------------- Pallas kernels ------------------------------

def fused_encoder_kernel(x_ref,
                         wqkv_ref, bqkv_ref, wo_ref, bo_ref,
                         ln1_g_ref, ln1_b_ref,
                         w1_ref, b1_ref, w2_ref, b2_ref,
                         ln2_g_ref, ln2_b_ref,
                         o_ref, act_ref, *, nhead):
    """All nn.TransformerEncoderLayer's fused: grid = (batch_tiles, nlayers).

    The activation is carried across the (innermost, "arbitrary") layer axis in
    the VMEM scratch `act_ref`; weights are per-layer blocks selected by the
    layer grid coordinate (default double-buffering prefetches layer l+1).
    """
    layer = pl.program_id(1)
    Bt, S, E = act_ref.shape
    D = E // nhead
    scale = 1.0 / math.sqrt(D)

    @pl.when(layer == 0)
    def _load_input():
        act_ref[...] = x_ref[...]

    x = act_ref[...].reshape(Bt * S, E)              # (N, E) f32, N = Bt*S
    x_bf = x.astype(jnp.bfloat16)

    # Fused QKV projection over the whole batch tile: (Bt*S, 3E), f32 acc.
    qkv = jnp.dot(x_bf, wqkv_ref[...],
                  preferred_element_type=jnp.float32) + bqkv_ref[...]

    # Fold 1/sqrt(D) into q (N*E muls) instead of scaling the SxS scores.
    q_all = qkv[:, 0 * E:1 * E] * scale
    k_all = qkv[:, 1 * E:2 * E]
    v_all = qkv[:, 2 * E:3 * E]

    # Causal mask built in-kernel (no SxS DMA per layer), hoisted out of loop.
    row = jax.lax.broadcasted_iota(jnp.int32, (S, S), 0)
    col = jax.lax.broadcasted_iota(jnp.int32, (S, S), 1)
    causal = (col <= row)[None, :, :]

    # Multi-head attention: head-batched rank-3 einsums per batch element of
    # the tile (static, unrolled). Row slices are sublane-aligned (multiples
    # of S); no per-head lane slicing or lane-axis concat.
    # TODO(synk): fold the batch tile into a single 'bqhd,bkhd->bhqk' rank-4
    # einsum once its Mosaic lowering is verified with pl.lower_as_mlir.
    # TODO(synk): for long sequences, kv-tile the scores (flash-style online
    # softmax) so the (H, S, S) buffer stays bounded (v7x VMEM).
    ctx_parts = []
    for b in range(Bt):
        rows = slice(b * S, (b + 1) * S)
        q = pltpu.einshape("mhd->hmd", q_all[rows].reshape(S, nhead, D))
        k = pltpu.einshape("mhd->hmd", k_all[rows].reshape(S, nhead, D))
        v = pltpu.einshape("mhd->hmd", v_all[rows].reshape(S, nhead, D))

        s = jnp.einsum('hqd,hkd->hqk',
                       q.astype(jnp.bfloat16), k.astype(jnp.bfloat16),
                       preferred_element_type=jnp.float32)       # (H, S, S)
        s = jnp.where(causal, s, MASK_VALUE)
        s = s - jnp.max(s, axis=-1, keepdims=True)
        p = jnp.exp(s)
        p = p * pl.reciprocal(jnp.sum(p, axis=-1, keepdims=True), approx=True)

        ctx = jnp.einsum('hqk,hkd->hqd',
                         p.astype(jnp.bfloat16), v.astype(jnp.bfloat16),
                         preferred_element_type=jnp.float32)     # (H, S, D)
        ctx_parts.append(pltpu.einshape("hmd->mhd", ctx).reshape(S, E))
    ctx_all = ctx_parts[0] if Bt == 1 else jnp.concatenate(ctx_parts, axis=0)

    attn = jnp.dot(ctx_all.astype(jnp.bfloat16), wo_ref[...],
                   preferred_element_type=jnp.float32) + bo_ref[...]

    # TODO(synk): dropout (p=0.5) inside the encoder layer is identity (eval).
    x1 = x + attn
    mu = jnp.mean(x1, axis=-1, keepdims=True)
    var = jnp.mean((x1 - mu) ** 2, axis=-1, keepdims=True)
    x1 = (x1 - mu) * jax.lax.rsqrt(var + 1e-5) * ln1_g_ref[...] + ln1_b_ref[...]

    h = jnp.dot(x1.astype(jnp.bfloat16), w1_ref[...],
                preferred_element_type=jnp.float32) + b1_ref[...]
    h = jnp.maximum(h, 0.0)
    ff = jnp.dot(h.astype(jnp.bfloat16), w2_ref[...],
                 preferred_element_type=jnp.float32) + b2_ref[...]

    x2 = x1 + ff
    mu = jnp.mean(x2, axis=-1, keepdims=True)
    var = jnp.mean((x2 - mu) ** 2, axis=-1, keepdims=True)
    x2 = (x2 - mu) * jax.lax.rsqrt(var + 1e-5) * ln2_g_ref[...] + ln2_b_ref[...]

    act_ref[...] = x2.reshape(Bt, S, E)

    @pl.when(layer == pl.num_programs(1) - 1)
    def _store_output():
        o_ref[...] = act_ref[...]


def decoder_logits_kernel(x_ref, wd_ref, bd_ref, logits_ref, lse_ref,
                          m_ref, s_ref):
    """Vocab-tiled decoder matmul + online log-sum-exp.

    Grid = (seq_tiles, vocab_tiles), vocab innermost/"arbitrary": the running
    max / sum-exp live in VMEM scratch across vocab tiles, the LSE is written
    once at the last vocab tile.
    """
    vi = pl.program_id(1)
    ts, B, E = x_ref.shape

    @pl.when(vi == 0)
    def _init():
        m_ref[...] = jnp.full_like(m_ref, MASK_VALUE)
        s_ref[...] = jnp.zeros_like(s_ref)

    x = x_ref[...].reshape(ts * B, E).astype(jnp.bfloat16)
    z = jnp.dot(x, wd_ref[...],
                preferred_element_type=jnp.float32) + bd_ref[...]   # (ts*B, tv)
    logits_ref[...] = z.reshape(ts, B, -1)

    m_tile = jnp.max(z, axis=-1, keepdims=True)
    m_new = jnp.maximum(m_ref[...], m_tile)
    s_ref[...] = (s_ref[...] * jnp.exp(m_ref[...] - m_new)
                  + jnp.sum(jnp.exp(z - m_new), axis=-1, keepdims=True))
    m_ref[...] = m_new

    @pl.when(vi == pl.num_programs(1) - 1)
    def _write_lse():
        lse_ref[...] = (m_ref[...] + jnp.log(s_ref[...])).reshape(ts, B, 1)


def decoder_finish_kernel(logits_ref, lse_ref, o_ref):
    """log_softmax = logits - lse, tiled elementwise over (seq, vocab)."""
    o_ref[...] = logits_ref[...] - lse_ref[...]


# ------------------------------ Pallas wrappers -----------------------------

def fused_encoder(x, p, nhead):
    """x: (B, S, E) f32; p: dict of per-layer-stacked weights."""
    B, S, E = x.shape
    nlayers = p['wqkv'].shape[0]
    Bt = _pick_bt(B, S)

    ins = (x,
           p['wqkv'], p['bqkv'], p['wo'], p['bo'],
           p['ln1_g'], p['ln1_b'],
           p['w1'], p['b1'], p['w2'], p['b2'],
           p['ln2_g'], p['ln2_b'])
    in_specs = [pl.BlockSpec((Bt, S, E), lambda bt, l: (bt, 0, 0))]
    in_specs += [_stacked_spec(w) for w in ins[1:]]

    return pl.pallas_call(
        functools.partial(fused_encoder_kernel, nhead=nhead),
        out_shape=jax.ShapeDtypeStruct((B, S, E), jnp.float32),
        grid=(B // Bt, nlayers),
        in_specs=in_specs,
        out_specs=pl.BlockSpec((Bt, S, E), lambda bt, l: (bt, 0, 0)),
        scratch_shapes=[pltpu.VMEM((Bt, S, E), jnp.float32)],
        compiler_params=pltpu.CompilerParams(
            dimension_semantics=("parallel", "arbitrary"),
            vmem_limit_bytes=_vmem_limit()),
    )(*ins)


def decoder(x_sbe, wd, bd):
    """x: (S, B, E) f32 -> (S, B, V) f32 log-probs, vocab-tiled two-pass LSE."""
    S, B, E = x_sbe.shape
    V = wd.shape[1]
    tile_s = _pick_tile_s(S, B)
    tile_v = _pick_tile_v(V)
    ns, nv = S // tile_s, V // tile_v

    logits, lse = pl.pallas_call(
        decoder_logits_kernel,
        out_shape=(jax.ShapeDtypeStruct((S, B, V), jnp.float32),
                   jax.ShapeDtypeStruct((S, B, 1), jnp.float32)),
        grid=(ns, nv),
        in_specs=[pl.BlockSpec((tile_s, B, E), lambda si, vi: (si, 0, 0)),
                  pl.BlockSpec((E, tile_v), lambda si, vi: (0, vi)),
                  pl.BlockSpec((1, tile_v), lambda si, vi: (0, vi))],
        out_specs=(pl.BlockSpec((tile_s, B, tile_v), lambda si, vi: (si, 0, vi)),
                   pl.BlockSpec((tile_s, B, 1), lambda si, vi: (si, 0, 0))),
        scratch_shapes=[pltpu.VMEM((tile_s * B, 1), jnp.float32),
                        pltpu.VMEM((tile_s * B, 1), jnp.float32)],
        compiler_params=pltpu.CompilerParams(
            dimension_semantics=("parallel", "arbitrary"),
            vmem_limit_bytes=_vmem_limit()),
    )(x_sbe, wd, bd)

    return pl.pallas_call(
        decoder_finish_kernel,
        out_shape=jax.ShapeDtypeStruct((S, B, V), jnp.float32),
        grid=(ns, nv),
        in_specs=[pl.BlockSpec((tile_s, B, tile_v), lambda si, vi: (si, 0, vi)),
                  pl.BlockSpec((tile_s, B, 1), lambda si, vi: (si, 0, 0))],
        out_specs=pl.BlockSpec((tile_s, B, tile_v), lambda si, vi: (si, 0, vi)),
        compiler_params=pltpu.CompilerParams(
            dimension_semantics=("parallel", "parallel"),
            vmem_limit_bytes=_vmem_limit()),
    )(logits, lse)


# ------------------------------- JAX glue -----------------------------------

def positional_encoding(max_len, d_model):
    position = jnp.arange(max_len, dtype=jnp.float32)[:, None]
    div_term = jnp.exp(jnp.arange(0, d_model, 2, dtype=jnp.float32)
                       * (-math.log(10000.0) / d_model))
    pe = jnp.zeros((max_len, d_model), jnp.float32)
    pe = pe.at[:, 0::2].set(jnp.sin(position * div_term))
    pe = pe.at[:, 1::2].set(jnp.cos(position * div_term))
    return pe


def init_params(key, ntokens, embed_size, hidden_size, nlayers):
    initrange = 0.1
    keys = jax.random.split(key, nlayers + 2)

    def unif(k, shape, dtype):
        return jax.random.uniform(k, shape, minval=-initrange,
                                  maxval=initrange,
                                  dtype=jnp.float32).astype(dtype)

    embed_w = unif(keys[0], (ntokens, embed_size), jnp.float32)

    per_layer = []
    for l in range(nlayers):
        k = jax.random.split(keys[1 + l], 4)
        per_layer.append(dict(
            # matmul weights bf16 (halved DMA / VMEM; f32 accumulation);
            # biases / LayerNorm params f32, stored (1, dim).
            # TODO(synk): fp8 weight storage on v7x (bf16+fp8 MXU) for 2x rate.
            wqkv=unif(k[0], (embed_size, 3 * embed_size), jnp.bfloat16),
            bqkv=jnp.zeros((1, 3 * embed_size), jnp.float32),
            wo=unif(k[1], (embed_size, embed_size), jnp.bfloat16),
            bo=jnp.zeros((1, embed_size), jnp.float32),
            ln1_g=jnp.ones((1, embed_size), jnp.float32),
            ln1_b=jnp.zeros((1, embed_size), jnp.float32),
            w1=unif(k[2], (embed_size, hidden_size), jnp.bfloat16),
            b1=jnp.zeros((1, hidden_size), jnp.float32),
            w2=unif(k[3], (hidden_size, embed_size), jnp.bfloat16),
            b2=jnp.zeros((1, embed_size), jnp.float32),
            ln2_g=jnp.ones((1, embed_size), jnp.float32),
            ln2_b=jnp.zeros((1, embed_size), jnp.float32),
        ))
    # Stack per-layer params on a leading (nlayers, ...) axis so the single
    # fused pallas_call can index them with its layer grid coordinate.
    enc_params = {name: jnp.stack([lp[name] for lp in per_layer])
                  for name in per_layer[0]}

    wd = unif(keys[-1], (embed_size, ntokens), jnp.bfloat16)
    bd = jnp.zeros((1, ntokens), jnp.float32)
    return embed_w, enc_params, wd, bd


def transformer_forward(src, embed_w, enc_params, wd, bd, *, nhead, embed_size):
    """src: (S, B) int32 token ids (PyTorch seq-first). Returns (S, B, ntokens)."""
    S, B = src.shape
    # Embedding lookup + sqrt(E) scaling + positional encoding (glue).
    x = embed_w[src] * math.sqrt(embed_size)          # (S, B, E)
    x = x + positional_encoding(S, embed_size)[:, None, :]
    # TODO(synk): PositionalEncoding dropout is identity (eval-mode forward).

    x = jnp.transpose(x, (1, 0, 2))                   # (B, S, E) for the encoder
    x = fused_encoder(x, enc_params, nhead)           # all layers, one call

    x = jnp.transpose(x, (1, 0, 2))                   # (S, B, E); small tensor
    return decoder(x, wd, bd)                         # (S, B, V) log-probs


# --------------------------------- main --------------------------------------

if __name__ == "__main__":
    ntokens, embed_size, hidden_size, nhead, nlayers = 32, 32, 64, 4, 2
    S, B = 8, 2

    key = jax.random.PRNGKey(0)
    kparam, kdata = jax.random.split(key)

    embed_w, enc_params, wd, bd = init_params(kparam, ntokens, embed_size,
                                              hidden_size, nlayers)
    src = jax.random.randint(kdata, (S, B), 0, ntokens, dtype=jnp.int32)

    fwd = jax.jit(functools.partial(transformer_forward,
                                    nhead=nhead, embed_size=embed_size))
    out = jax.block_until_ready(fwd(src, embed_w, enc_params, wd, bd))

    assert out.shape == (S, B, ntokens), out.shape
    assert bool(jnp.all(jnp.isfinite(out)))
    # log_softmax rows must sum (in prob space) to ~1.
    probs_sum = jnp.sum(jnp.exp(out), axis=-1)
    assert bool(jnp.all(jnp.abs(probs_sum - 1.0) < 1e-3))
    print("KERNEL_OK")
</pallas_src>

<mosaic_0001>
module attributes {stable_mosaic.version = 11 : i64} {
  func.func @decoder_finish_kernel(%arg0: i32, %arg1: i32, %arg2: memref<4x2x32xf32, #tpu.memory_space<vmem>>, %arg3: memref<4x2x1xf32, #tpu.memory_space<vmem>>, %arg4: memref<4x2x32xf32, #tpu.memory_space<vmem>>) attributes {dimension_semantics = [#tpu.dimension_semantics<parallel>, #tpu.dimension_semantics<parallel>], iteration_bounds = array<i64: 2, 1>, scalar_prefetch = 0 : i64, scratch_operands = 0 : i64, tpu.core_type = #tpu.core_type<tc>, window_params = [{transform_indices = @transform_0, window_bounds = array<i64: 4, 2, 32>}, {transform_indices = @transform_1, window_bounds = array<i64: 4, 2, 1>}, {transform_indices = @transform_2, window_bounds = array<i64: 4, 2, 32>}]} {
    %c0 = arith.constant 0 : index
    %c0_0 = arith.constant 0 : index
    %c0_1 = arith.constant 0 : index
    %0 = vector.load %arg2[%c0, %c0_0, %c0_1] : memref<4x2x32xf32, #tpu.memory_space<vmem>>, vector<4x2x32xf32>
    %c0_2 = arith.constant 0 : index
    %c0_3 = arith.constant 0 : index
    %c0_4 = arith.constant 0 : index
    %1 = vector.load %arg3[%c0_2, %c0_3, %c0_4] : memref<4x2x1xf32, #tpu.memory_space<vmem>>, vector<4x2x1xf32>
    %2 = vector.broadcast %1 : vector<4x2x1xf32> to vector<4x2x32xf32>
    %3 = arith.subf %0, %2 : vector<4x2x32xf32>
    %c0_5 = arith.constant 0 : index
    %c0_6 = arith.constant 0 : index
    %c0_7 = arith.constant 0 : index
    %4 = vector.load %arg4[%c0_5, %c0_6, %c0_7] : memref<4x2x32xf32, #tpu.memory_space<vmem>>, vector<4x2x32xf32>
    tpu.vector_store %arg4[%c0_5, %c0_6, %c0_7], %3 {strides = array<i32>} : memref<4x2x32xf32, #tpu.memory_space<vmem>>, vector<4x2x32xf32>,
    return
  }
  func.func @transform_0(%arg0: i32, %arg1: i32) -> (i32, i32, i32) {
    %c0_i32 = arith.constant 0 : i32
    %c0_i32_0 = arith.constant 0 : i32
    return %arg0, %c0_i32, %arg1 : i32, i32, i32
  }
  func.func @transform_1(%arg0: i32, %arg1: i32) -> (i32, i32, i32) {
    %c0_i32 = arith.constant 0 : i32
    %c0_i32_0 = arith.constant 0 : i32
    %c0_i32_1 = arith.constant 0 : i32
    return %arg0, %c0_i32, %c0_i32_0 : i32, i32, i32
  }
  func.func @transform_2(%arg0: i32, %arg1: i32) -> (i32, i32, i32) {
    %c0_i32 = arith.constant 0 : i32
    %c0_i32_0 = arith.constant 0 : i32
    return %arg0, %c0_i32, %arg1 : i32, i32, i32
  }
}

module attributes {stable_mosaic.version = 11 : i64} {
  func.func @decoder_logits_kernel(%arg0: i32, %arg1: i32, %arg2: memref<4x2x32xf32, #tpu.memory_space<vmem>>, %arg3: memref<32x32xbf16, #tpu.memory_space<vmem>>, %arg4: memref<1x32xf32, #tpu.memory_space<vmem>>, %arg5: memref<4x2x32xf32, #tpu.memory_space<vmem>>, %arg6: memref<4x2x1xf32, #tpu.memory_space<vmem>>, %arg7: memref<8x1xf32, #tpu.memory_space<vmem>>, %arg8: memref<8x1xf32, #tpu.memory_space<vmem>>) attributes {dimension_semantics = [#tpu.dimension_semantics<parallel>, #tpu.dimension_semantics<arbitrary>], iteration_bounds = array<i64: 2, 1>, scalar_prefetch = 0 : i64, scratch_operands = 2 : i64, tpu.core_type = #tpu.core_type<tc>, window_params = [{transform_indices = @transform_0, window_bounds = array<i64: 4, 2, 32>}, {transform_indices = @transform_1, window_bounds = array<i64: 32, 32>}, {transform_indices = @transform_2, window_bounds = array<i64: 1, 32>}, {transform_indices = @transform_3, window_bounds = array<i64: 4, 2, 32>}, {transform_indices = @transform_4, window_bounds = array<i64: 4, 2, 1>}]} {
    %c0_i32 = arith.constant 0 : i32
    %0 = arith.cmpi eq, %arg1, %c0_i32 : i32
    %1 = arith.extui %0 : i1 to i32
    %c0_i32_0 = arith.constant 0 : i32
    %2 = arith.cmpi ne, %1, %c0_i32_0 : i32
    scf.if %2 {
      %cst_24 = arith.constant -1.000000e+30 : f32
      %33 = vector.broadcast %cst_24 : f32 to vector<8x1xf32>
      %c0_25 = arith.constant 0 : index
      %c0_26 = arith.constant 0 : index
      %34 = vector.load %arg7[%c0_25, %c0_26] : memref<8x1xf32, #tpu.memory_space<vmem>>, vector<8x1xf32>
      tpu.vector_store %arg7[%c0_25, %c0_26], %33 {strides = array<i32>} : memref<8x1xf32, #tpu.memory_space<vmem>>, vector<8x1xf32>,
      %cst_27 = arith.constant 0.000000e+00 : f32
      %35 = vector.broadcast %cst_27 : f32 to vector<8x1xf32>
      %c0_28 = arith.constant 0 : index
      %c0_29 = arith.constant 0 : index
      %36 = vector.load %arg8[%c0_28, %c0_29] : memref<8x1xf32, #tpu.memory_space<vmem>>, vector<8x1xf32>
      tpu.vector_store %arg8[%c0_28, %c0_29], %35 {strides = array<i32>} : memref<8x1xf32, #tpu.memory_space<vmem>>, vector<8x1xf32>,
    } else {
    }
    %c0 = arith.constant 0 : index
    %c0_1 = arith.constant 0 : index
    %c0_2 = arith.constant 0 : index
    %3 = vector.load %arg2[%c0, %c0_1, %c0_2] : memref<4x2x32xf32, #tpu.memory_space<vmem>>, vector<4x2x32xf32>
    %4 = vector.shape_cast %3 : vector<4x2x32xf32> to vector<8x32xf32>
    %5 = arith.truncf %4 : vector<8x32xf32> to vector<8x32xbf16>
    %c0_3 = arith.constant 0 : index
    %c0_4 = arith.constant 0 : index
    %6 = vector.load %arg3[%c0_3, %c0_4] : memref<32x32xbf16, #tpu.memory_space<vmem>>, vector<32x32xbf16>
    %cst = arith.constant dense<0.000000e+00> : vector<8x32xf32>
    %7 = tpu.matmul %5, %6, %cst {dimension_numbers = #tpu.dot_dimension_numbers<[1], [0], [0], [1], [0, 0, 1, 1], [], []>} : vector<8x32xbf16>, vector<32x32xbf16>, vector<8x32xf32> -> vector<8x32xf32>
    %c0_5 = arith.constant 0 : index
    %c0_6 = arith.constant 0 : index
    %8 = vector.load %arg4[%c0_5, %c0_6] : memref<1x32xf32, #tpu.memory_space<vmem>>, vector<1x32xf32>
    %9 = vector.broadcast %8 : vector<1x32xf32> to vector<8x32xf32>
    %10 = arith.addf %7, %9 : vector<8x32xf32>
    %11 = vector.shape_cast %10 : vector<8x32xf32> to vector<4x2x32xf32>
    %c0_7 = arith.constant 0 : index
    %c0_8 = arith.constant 0 : index
    %c0_9 = arith.constant 0 : index
    %12 = vector.load %arg5[%c0_7, %c0_8, %c0_9] : memref<4x2x32xf32, #tpu.memory_space<vmem>>, vector<4x2x32xf32>
    tpu.vector_store %arg5[%c0_7, %c0_8, %c0_9], %11 {strides = array<i32>} : memref<4x2x32xf32, #tpu.memory_space<vmem>>, vector<4x2x32xf32>,
    %cst_10 = arith.constant dense<0xFF800000> : vector<8xf32>
    %13 = vector.multi_reduction <maximumf>, %10, %cst_10 [1] : vector<8x32xf32> to vector<8xf32>
    %14 = vector.shape_cast %13 : vector<8xf32> to vector<8x1xf32>
    %c0_11 = arith.constant 0 : index
    %c0_12 = arith.constant 0 : index
    %15 = vector.load %arg7[%c0_11, %c0_12] : memref<8x1xf32, #tpu.memory_space<vmem>>, vector<8x1xf32>
    %16 = arith.maximumf %15, %14 : vector<8x1xf32>
    %c0_13 = arith.constant 0 : index
    %c0_14 = arith.constant 0 : index
    %17 = vector.load %arg8[%c0_13, %c0_14] : memref<8x1xf32, #tpu.memory_space<vmem>>, vector<8x1xf32>
    %c0_15 = arith.constant 0 : index
    %c0_16 = arith.constant 0 : index
    %18 = vector.load %arg7[%c0_15, %c0_16] : memref<8x1xf32, #tpu.memory_space<vmem>>, vector<8x1xf32>
    %19 = arith.subf %18, %16 : vector<8x1xf32>
    %20 = math.exp %19 : vector<8x1xf32>
    %21 = arith.mulf %17, %20 : vector<8x1xf32>
    %22 = vector.broadcast %16 : vector<8x1xf32> to vector<8x32xf32>
    %23 = arith.subf %10, %22 : vector<8x32xf32>
    %24 = math.exp %23 : vector<8x32xf32>
    %cst_17 = arith.constant dense<0.000000e+00> : vector<8xf32>
    %25 = vector.multi_reduction <add>, %24, %cst_17 [1] : vector<8x32xf32> to vector<8xf32>
    %26 = vector.shape_cast %25 : vector<8xf32> to vector<8x1xf32>
    %27 = arith.addf %21, %26 : vector<8x1xf32>
    %c0_18 = arith.constant 0 : index
    %c0_19 = arith.constant 0 : index
    %28 = vector.load %arg8[%c0_18, %c0_19] : memref<8x1xf32, #tpu.memory_space<vmem>>, vector<8x1xf32>
    tpu.vector_store %arg8[%c0_18, %c0_19], %27 {strides = array<i32>} : memref<8x1xf32, #tpu.memory_space<vmem>>, vector<8x1xf32>,
    %c0_20 = arith.constant 0 : index
    %c0_21 = arith.constant 0 : index
    %29 = vector.load %arg7[%c0_20, %c0_21] : memref<8x1xf32, #tpu.memory_space<vmem>>, vector<8x1xf32>
    tpu.vector_store %arg7[%c0_20, %c0_21], %16 {strides = array<i32>} : memref<8x1xf32, #tpu.memory_space<vmem>>, vector<8x1xf32>,
    %c0_i32_22 = arith.constant 0 : i32
    %30 = arith.cmpi eq, %arg1, %c0_i32_22 : i32
    %31 = arith.extui %30 : i1 to i32
    %c0_i32_23 = arith.constant 0 : i32
    %32 = arith.cmpi ne, %31, %c0_i32_23 : i32
    scf.if %32 {
      %c0_24 = arith.constant 0 : index
      %c0_25 = arith.constant 0 : index
      %33 = vector.load %arg7[%c0_24, %c0_25] : memref<8x1xf32, #tpu.memory_space<vmem>>, vector<8x1xf32>
      %c0_26 = arith.constant 0 : index
      %c0_27 = arith.constant 0 : index
      %34 = vector.load %arg8[%c0_26, %c0_27] : memref<8x1xf32, #tpu.memory_space<vmem>>, vector<8x1xf32>
      %35 = math.log %34 : vector<8x1xf32>
      %36 = arith.addf %33, %35 : vector<8x1xf32>
      %37 = vector.shape_cast %36 : vector<8x1xf32> to vector<4x2x1xf32>
      %c0_28 = arith.constant 0 : index
      %c0_29 = arith.constant 0 : index
      %c0_30 = arith.constant 0 : index
      %38 = vector.load %arg6[%c0_28, %c0_29, %c0_30] : memref<4x2x1xf32, #tpu.memory_space<vmem>>, vector<4x2x1xf32>
      tpu.vector_store %arg6[%c0_28, %c0_29, %c0_30], %37 {strides = array<i32>} : memref<4x2x1xf32, #tpu.memory_space<vmem>>, vector<4x2x1xf32>,
    } else {
    }
    return
  }
  func.func @transform_0(%arg0: i32, %arg1: i32) -> (i32, i32, i32) {
    %c0_i32 = arith.constant 0 : i32
    %c0_i32_0 = arith.constant 0 : i32
    %c0_i32_1 = arith.constant 0 : i32
    return %arg0, %c0_i32, %c0_i32_0 : i32, i32, i32
  }
  func.func @transform_1(%arg0: i32, %arg1: i32) -> (i32, i32) {
    %c0_i32 = arith.constant 0 : i32
    %c0_i32_0 = arith.constant 0 : i32
    return %c0_i32, %arg1 : i32, i32
  }
  func.func @transform_2(%arg0: i32, %arg1: i32) -> (i32, i32) {
    %c0_i32 = arith.constant 0 : i32
    %c0_i32_0 = arith.constant 0 : i32
    return %c0_i32, %arg1 : i32, i32
  }
  func.func @transform_3(%arg0: i32, %arg1: i32) -> (i32, i32, i32) {
    %c0_i32 = arith.constant 0 : i32
    %c0_i32_0 = arith.constant 0 : i32
    return %arg0, %c0_i32, %arg1 : i32, i32, i32
  }
  func.func @transform_4(%arg0: i32, %arg1: i32) -> (i32, i32, i32) {
    %c0_i32 = arith.constant 0 : i32
    %c0_i32_0 = arith.constant 0 : i32
    %c0_i32_1 = arith.constant 0 : i32
    return %arg0, %c0_i32, %c0_i32_0 : i32, i32, i32
  }
}

module attributes {stable_mosaic.version = 11 : i64} {
  func.func @fused_encoder_kernel(%arg0: i32, %arg1: i32, %arg2: memref<2x8x32xf32, #tpu.memory_space<vmem>>, %arg3: memref<1x32x96xbf16, #tpu.memory_space<vmem>>, %arg4: memref<1x1x96xf32, #tpu.memory_space<vmem>>, %arg5: memref<1x32x32xbf16, #tpu.memory_space<vmem>>, %arg6: memref<1x1x32xf32, #tpu.memory_space<vmem>>, %arg7: memref<1x1x32xf32, #tpu.memory_space<vmem>>, %arg8: memref<1x1x32xf32, #tpu.memory_space<vmem>>, %arg9: memref<1x32x64xbf16, #tpu.memory_space<vmem>>, %arg10: memref<1x1x64xf32, #tpu.memory_space<vmem>>, %arg11: memref<1x64x32xbf16, #tpu.memory_space<vmem>>, %arg12: memref<1x1x32xf32, #tpu.memory_space<vmem>>, %arg13: memref<1x1x32xf32, #tpu.memory_space<vmem>>, %arg14: memref<1x1x32xf32, #tpu.memory_space<vmem>>, %arg15: memref<2x8x32xf32, #tpu.memory_space<vmem>>, %arg16: memref<2x8x32xf32, #tpu.memory_space<vmem>>) attributes {dimension_semantics = [#tpu.dimension_semantics<parallel>, #tpu.dimension_semantics<arbitrary>], iteration_bounds = array<i64: 1, 2>, scalar_prefetch = 0 : i64, scratch_operands = 1 : i64, tpu.core_type = #tpu.core_type<tc>, window_params = [{transform_indices = @transform_0, window_bounds = array<i64: 2, 8, 32>}, {transform_indices = @transform_1, window_bounds = array<i64: 1, 32, 96>}, {transform_indices = @transform_2, window_bounds = array<i64: 1, 1, 96>}, {transform_indices = @transform_3, window_bounds = array<i64: 1, 32, 32>}, {transform_indices = @transform_4, window_bounds = array<i64: 1, 1, 32>}, {transform_indices = @transform_5, window_bounds = array<i64: 1, 1, 32>}, {transform_indices = @transform_6, window_bounds = array<i64: 1, 1, 32>}, {transform_indices = @transform_7, window_bounds = array<i64: 1, 32, 64>}, {transform_indices = @transform_8, window_bounds = array<i64: 1, 1, 64>}, {transform_indices = @transform_9, window_bounds = array<i64: 1, 64, 32>}, {transform_indices = @transform_10, window_bounds = array<i64: 1, 1, 32>}, {transform_indices = @transform_11, window_bounds = array<i64: 1, 1, 32>}, {transform_indices = @transform_12, window_bounds = array<i64: 1, 1, 32>}, {transform_indices = @transform_13, window_bounds = array<i64: 2, 8, 32>}]} {
    %c0_i32 = arith.constant 0 : i32
    %0 = arith.cmpi eq, %arg1, %c0_i32 : i32
    %1 = arith.extui %0 : i1 to i32
    %c0_i32_0 = arith.constant 0 : i32
    %2 = arith.cmpi ne, %1, %c0_i32_0 : i32
    scf.if %2 {
      %c0_68 = arith.constant 0 : index
      %c0_69 = arith.constant 0 : index
      %c0_70 = arith.constant 0 : index
      %170 = vector.load %arg2[%c0_68, %c0_69, %c0_70] : memref<2x8x32xf32, #tpu.memory_space<vmem>>, vector<2x8x32xf32>
      %c0_71 = arith.constant 0 : index
      %c0_72 = arith.constant 0 : index
      %c0_73 = arith.constant 0 : index
      %171 = vector.load %arg16[%c0_71, %c0_72, %c0_73] : memref<2x8x32xf32, #tpu.memory_space<vmem>>, vector<2x8x32xf32>
      tpu.vector_store %arg16[%c0_71, %c0_72, %c0_73], %170 {strides = array<i32>} : memref<2x8x32xf32, #tpu.memory_space<vmem>>, vector<2x8x32xf32>,
    } else {
    }
    %c0 = arith.constant 0 : index
    %c0_1 = arith.constant 0 : index
    %c0_2 = arith.constant 0 : index
    %3 = vector.load %arg16[%c0, %c0_1, %c0_2] : memref<2x8x32xf32, #tpu.memory_space<vmem>>, vector<2x8x32xf32>
    %4 = vector.shape_cast %3 : vector<2x8x32xf32> to vector<16x32xf32>
    %5 = arith.truncf %4 : vector<16x32xf32> to vector<16x32xbf16>
    %c0_3 = arith.constant 0 : index
    %c0_4 = arith.constant 0 : index
    %c0_5 = arith.constant 0 : index
    %6 = vector.load %arg3[%c0_3, %c0_4, %c0_5] : memref<1x32x96xbf16, #tpu.memory_space<vmem>>, vector<1x32x96xbf16>
    %7 = vector.shape_cast %6 : vector<1x32x96xbf16> to vector<32x96xbf16>
    %cst = arith.constant dense<0.000000e+00> : vector<16x96xf32>
    %8 = tpu.matmul %5, %7, %cst {dimension_numbers = #tpu.dot_dimension_numbers<[1], [0], [0], [1], [0, 0, 1, 1], [], []>} : vector<16x32xbf16>, vector<32x96xbf16>, vector<16x96xf32> -> vector<16x96xf32>
    %c0_6 = arith.constant 0 : index
    %c0_7 = arith.constant 0 : index
    %c0_8 = arith.constant 0 : index
    %9 = vector.load %arg4[%c0_6, %c0_7, %c0_8] : memref<1x1x96xf32, #tpu.memory_space<vmem>>, vector<1x1x96xf32>
    %10 = vector.shape_cast %9 : vector<1x1x96xf32> to vector<1x96xf32>
    %11 = vector.broadcast %10 : vector<1x96xf32> to vector<16x96xf32>
    %12 = arith.addf %8, %11 : vector<16x96xf32>
    %13 = vector.extract_strided_slice %12 {offsets = [0, 0], sizes = [16, 32], strides = [1, 1]} : vector<16x96xf32> to vector<16x32xf32>
    %cst_9 = arith.constant 0.353553385 : f32
    %14 = vector.broadcast %cst_9 : f32 to vector<16x32xf32>
    %15 = arith.mulf %13, %14 : vector<16x32xf32>
    %16 = vector.extract_strided_slice %12 {offsets = [0, 32], sizes = [16, 32], strides = [1, 1]} : vector<16x96xf32> to vector<16x32xf32>
    %17 = vector.extract_strided_slice %12 {offsets = [0, 64], sizes = [16, 32], strides = [1, 1]} : vector<16x96xf32> to vector<16x32xf32>
    %18 = tpu.iota {dimensions = array<i32: 0>} : vector<8x8xi32>
    %19 = tpu.iota {dimensions = array<i32: 1>} : vector<8x8xi32>
    %20 = arith.cmpi sle, %19, %18 : vector<8x8xi32>
    %21 = vector.shape_cast %20 : vector<8x8xi1> to vector<1x8x8xi1>
    %22 = vector.extract_strided_slice %15 {offsets = [0, 0], sizes = [8, 32], strides = [1, 1]} : vector<16x32xf32> to vector<8x32xf32>
    %23 = vector.shape_cast %22 : vector<8x32xf32> to vector<8x4x8xf32>
    %24 = tpu.transpose %23, [1, 0, 2] : vector<8x4x8xf32> -> vector<4x8x8xf32>
    %25 = vector.extract_strided_slice %16 {offsets = [0, 0], sizes = [8, 32], strides = [1, 1]} : vector<16x32xf32> to vector<8x32xf32>
    %26 = vector.shape_cast %25 : vector<8x32xf32> to vector<8x4x8xf32>
    %27 = tpu.transpose %26, [1, 0, 2] : vector<8x4x8xf32> -> vector<4x8x8xf32>
    %28 = vector.extract_strided_slice %17 {offsets = [0, 0], sizes = [8, 32], strides = [1, 1]} : vector<16x32xf32> to vector<8x32xf32>
    %29 = vector.shape_cast %28 : vector<8x32xf32> to vector<8x4x8xf32>
    %30 = tpu.transpose %29, [1, 0, 2] : vector<8x4x8xf32> -> vector<4x8x8xf32>
    %31 = arith.truncf %24 : vector<4x8x8xf32> to vector<4x8x8xbf16>
    %32 = arith.truncf %27 : vector<4x8x8xf32> to vector<4x8x8xbf16>
    "tpu.trace_start"() <{level = 10 : i32, message = "hqd,hkd->hqk"}> : () -> ()
    %cst_10 = arith.constant dense<0.000000e+00> : vector<4x8x8xf32>
    %33 = tpu.matmul %31, %32, %cst_10 {dimension_numbers = #tpu.dot_dimension_numbers<[2], [2], [1], [1], [0, 0, 0, 1, 1, 1], [0], [0]>} : vector<4x8x8xbf16>, vector<4x8x8xbf16>, vector<4x8x8xf32> -> vector<4x8x8xf32>
    %cst_11 = arith.constant -1.000000e+30 : f32
    "tpu.trace_stop"() : () -> ()
    %34 = vector.shape_cast %21 : vector<1x8x8xi1> to vector<1x8x8xi1>
    %35 = vector.broadcast %34 : vector<1x8x8xi1> to vector<4x8x8xi1>
    %36 = vector.broadcast %cst_11 : f32 to vector<4x8x8xf32>
    %37 = arith.select %35, %33, %36 : vector<4x8x8xi1>, vector<4x8x8xf32>
    %cst_12 = arith.constant dense<0xFF800000> : vector<4x8xf32>
    %38 = vector.multi_reduction <maximumf>, %37, %cst_12 [2] : vector<4x8x8xf32> to vector<4x8xf32>
    %39 = vector.shape_cast %38 : vector<4x8xf32> to vector<4x8x1xf32>
    %40 = vector.broadcast %39 : vector<4x8x1xf32> to vector<4x8x8xf32>
    %41 = arith.subf %37, %40 : vector<4x8x8xf32>
    %42 = math.exp %41 : vector<4x8x8xf32>
    %cst_13 = arith.constant dense<0.000000e+00> : vector<4x8xf32>
    %43 = vector.multi_reduction <add>, %42, %cst_13 [2] : vector<4x8x8xf32> to vector<4x8xf32>
    %44 = vector.shape_cast %43 : vector<4x8xf32> to vector<4x8x1xf32>
    %45 = tpu.reciprocal %44 {approx = true} : vector<4x8x1xf32> -> vector<4x8x1xf32>
    %46 = vector.broadcast %45 : vector<4x8x1xf32> to vector<4x8x8xf32>
    %47 = arith.mulf %42, %46 : vector<4x8x8xf32>
    %48 = arith.truncf %47 : vector<4x8x8xf32> to vector<4x8x8xbf16>
    %49 = arith.truncf %30 : vector<4x8x8xf32> to vector<4x8x8xbf16>
    "tpu.trace_start"() <{level = 10 : i32, message = "hqk,hkd->hqd"}> : () -> ()
    %cst_14 = arith.constant dense<0.000000e+00> : vector<4x8x8xf32>
    %50 = tpu.matmul %48, %49, %cst_14 {dimension_numbers = #tpu.dot_dimension_numbers<[2], [1], [1], [2], [0, 0, 0, 1, 1, 2], [0], [0]>} : vector<4x8x8xbf16>, vector<4x8x8xbf16>, vector<4x8x8xf32> -> vector<4x8x8xf32>
    "tpu.trace_stop"() : () -> ()
    %51 = tpu.transpose %50, [1, 0, 2] : vector<4x8x8xf32> -> vector<8x4x8xf32>
    %52 = vector.shape_cast %51 : vector<8x4x8xf32> to vector<8x32xf32>
    %53 = vector.extract_strided_slice %15 {offsets = [8, 0], sizes = [8, 32], strides = [1, 1]} : vector<16x32xf32> to vector<8x32xf32>
    %54 = vector.shape_cast %53 : vector<8x32xf32> to vector<8x4x8xf32>
    %55 = tpu.transpose %54, [1, 0, 2] : vector<8x4x8xf32> -> vector<4x8x8xf32>
    %56 = vector.extract_strided_slice %16 {offsets = [8, 0], sizes = [8, 32], strides = [1, 1]} : vector<16x32xf32> to vector<8x32xf32>
    %57 = vector.shape_cast %56 : vector<8x32xf32> to vector<8x4x8xf32>
    %58 = tpu.transpose %57, [1, 0, 2] : vector<8x4x8xf32> -> vector<4x8x8xf32>
    %59 = vector.extract_strided_slice %17 {offsets = [8, 0], sizes = [8, 32], strides = [1, 1]} : vector<16x32xf32> to vector<8x32xf32>
    %60 = vector.shape_cast %59 : vector<8x32xf32> to vector<8x4x8xf32>
    %61 = tpu.transpose %60, [1, 0, 2] : vector<8x4x8xf32> -> vector<4x8x8xf32>
    %62 = arith.truncf %55 : vector<4x8x8xf32> to vector<4x8x8xbf16>
    %63 = arith.truncf %58 : vector<4x8x8xf32> to vector<4x8x8xbf16>
    "tpu.trace_start"() <{level = 10 : i32, message = "hqd,hkd->hqk"}> : () -> ()
    %cst_15 = arith.constant dense<0.000000e+00> : vector<4x8x8xf32>
    %64 = tpu.matmul %62, %63, %cst_15 {dimension_numbers = #tpu.dot_dimension_numbers<[2], [2], [1], [1], [0, 0, 0, 1, 1, 1], [0], [0]>} : vector<4x8x8xbf16>, vector<4x8x8xbf16>, vector<4x8x8xf32> -> vector<4x8x8xf32>
    %cst_16 = arith.constant -1.000000e+30 : f32
    "tpu.trace_stop"() : () -> ()
    %65 = vector.shape_cast %21 : vector<1x8x8xi1> to vector<1x8x8xi1>
    %66 = vector.broadcast %65 : vector<1x8x8xi1> to vector<4x8x8xi1>
    %67 = vector.broadcast %cst_16 : f32 to vector<4x8x8xf32>
    %68 = arith.select %66, %64, %67 : vector<4x8x8xi1>, vector<4x8x8xf32>
    %cst_17 = arith.constant dense<0xFF800000> : vector<4x8xf32>
    %69 = vector.multi_reduction <maximumf>, %68, %cst_17 [2] : vector<4x8x8xf32> to vector<4x8xf32>
    %70 = vector.shape_cast %69 : vector<4x8xf32> to vector<4x8x1xf32>
    %71 = vector.broadcast %70 : vector<4x8x1xf32> to vector<4x8x8xf32>
    %72 = arith.subf %68, %71 : vector<4x8x8xf32>
    %73 = math.exp %72 : vector<4x8x8xf32>
    %cst_18 = arith.constant dense<0.000000e+00> : vector<4x8xf32>
    %74 = vector.multi_reduction <add>, %73, %cst_18 [2] : vector<4x8x8xf32> to vector<4x8xf32>
    %75 = vector.shape_cast %74 : vector<4x8xf32> to vector<4x8x1xf32>
    %76 = tpu.reciprocal %75 {approx = true} : vector<4x8x1xf32> -> vector<4x8x1xf32>
    %77 = vector.broadcast %76 : vector<4x8x1xf32> to vector<4x8x8xf32>
    %78 = arith.mulf %73, %77 : vector<4x8x8xf32>
    %79 = arith.truncf %78 : vector<4x8x8xf32> to vector<4x8x8xbf16>
    %80 = arith.truncf %61 : vector<4x8x8xf32> to vector<4x8x8xbf16>
    "tpu.trace_start"() <{level = 10 : i32, message = "hqk,hkd->hqd"}> : () -> ()
    %cst_19 = arith.constant dense<0.000000e+00> : vector<4x8x8xf32>
    %81 = tpu.matmul %79, %80, %cst_19 {dimension_numbers = #tpu.dot_dimension_numbers<[2], [1], [1], [2], [0, 0, 0, 1, 1, 2], [0], [0]>} : vector<4x8x8xbf16>, vector<4x8x8xbf16>, vector<4x8x8xf32> -> vector<4x8x8xf32>
    "tpu.trace_stop"() : () -> ()
    %82 = tpu.transpose %81, [1, 0, 2] : vector<4x8x8xf32> -> vector<8x4x8xf32>
    %83 = vector.shape_cast %82 : vector<8x4x8xf32> to vector<8x32xf32>
    %84 = tpu.concatenate %52, %83 in 0 : vector<8x32xf32>, vector<8x32xf32> -> vector<16x32xf32>
    %85 = arith.truncf %84 : vector<16x32xf32> to vector<16x32xbf16>
    %c0_20 = arith.constant 0 : index
    %c0_21 = arith.constant 0 : index
    %c0_22 = arith.constant 0 : index
    %86 = vector.load %arg5[%c0_20, %c0_21, %c0_22] : memref<1x32x32xbf16, #tpu.memory_space<vmem>>, vector<1x32x32xbf16>
    %87 = vector.shape_cast %86 : vector<1x32x32xbf16> to vector<32x32xbf16>
    %cst_23 = arith.constant dense<0.000000e+00> : vector<16x32xf32>
    %88 = tpu.matmul %85, %87, %cst_23 {dimension_numbers = #tpu.dot_dimension_numbers<[1], [0], [0], [1], [0, 0, 1, 1], [], []>} : vector<16x32xbf16>, vector<32x32xbf16>, vector<16x32xf32> -> vector<16x32xf32>
    %c0_24 = arith.constant 0 : index
    %c0_25 = arith.constant 0 : index
    %c0_26 = arith.constant 0 : index
    %89 = vector.load %arg6[%c0_24, %c0_25, %c0_26] : memref<1x1x32xf32, #tpu.memory_space<vmem>>, vector<1x1x32xf32>
    %90 = vector.shape_cast %89 : vector<1x1x32xf32> to vector<1x32xf32>
    %91 = vector.broadcast %90 : vector<1x32xf32> to vector<16x32xf32>
    %92 = arith.addf %88, %91 : vector<16x32xf32>
    %93 = arith.addf %4, %92 : vector<16x32xf32>
    %cst_27 = arith.constant dense<0.000000e+00> : vector<16xf32>
    %94 = vector.multi_reduction <add>, %93, %cst_27 [1] : vector<16x32xf32> to vector<16xf32>
    %95 = vector.shape_cast %94 : vector<16xf32> to vector<16x1xf32>
    %cst_28 = arith.constant 3.200000e+01 : f32
    %96 = vector.broadcast %cst_28 : f32 to vector<16x1xf32>
    %97 = arith.divf %95, %96 : vector<16x1xf32>
    %98 = vector.broadcast %97 : vector<16x1xf32> to vector<16x32xf32>
    %99 = arith.subf %93, %98 : vector<16x32xf32>
    %100 = arith.mulf %99, %99 : vector<16x32xf32>
    %cst_29 = arith.constant dense<0.000000e+00> : vector<16xf32>
    %101 = vector.multi_reduction <add>, %100, %cst_29 [1] : vector<16x32xf32> to vector<16xf32>
    %102 = vector.shape_cast %101 : vector<16xf32> to vector<16x1xf32>
    %cst_30 = arith.constant 3.200000e+01 : f32
    %103 = vector.broadcast %cst_30 : f32 to vector<16x1xf32>
    %104 = arith.divf %102, %103 : vector<16x1xf32>
    %105 = vector.broadcast %97 : vector<16x1xf32> to vector<16x32xf32>
    %106 = arith.subf %93, %105 : vector<16x32xf32>
    %cst_31 = arith.constant 9.99999974E-6 : f32
    %107 = vector.broadcast %cst_31 : f32 to vector<16x1xf32>
    %108 = arith.addf %104, %107 : vector<16x1xf32>
    %109 = math.rsqrt %108 : vector<16x1xf32>
    %110 = vector.broadcast %109 : vector<16x1xf32> to vector<16x32xf32>
    %111 = arith.mulf %106, %110 : vector<16x32xf32>
    %c0_32 = arith.constant 0 : index
    %c0_33 = arith.constant 0 : index
    %c0_34 = arith.constant 0 : index
    %112 = vector.load %arg7[%c0_32, %c0_33, %c0_34] : memref<1x1x32xf32, #tpu.memory_space<vmem>>, vector<1x1x32xf32>
    %113 = vector.shape_cast %112 : vector<1x1x32xf32> to vector<1x32xf32>
    %114 = vector.broadcast %113 : vector<1x32xf32> to vector<16x32xf32>
    %115 = arith.mulf %111, %114 : vector<16x32xf32>
    %c0_35 = arith.constant 0 : index
    %c0_36 = arith.constant 0 : index
    %c0_37 = arith.constant 0 : index
    %116 = vector.load %arg8[%c0_35, %c0_36, %c0_37] : memref<1x1x32xf32, #tpu.memory_space<vmem>>, vector<1x1x32xf32>
    %117 = vector.shape_cast %116 : vector<1x1x32xf32> to vector<1x32xf32>
    %118 = vector.broadcast %117 : vector<1x32xf32> to vector<16x32xf32>
    %119 = arith.addf %115, %118 : vector<16x32xf32>
    %120 = arith.truncf %119 : vector<16x32xf32> to vector<16x32xbf16>
    %c0_38 = arith.constant 0 : index
    %c0_39 = arith.constant 0 : index
    %c0_40 = arith.constant 0 : index
    %121 = vector.load %arg9[%c0_38, %c0_39, %c0_40] : memref<1x32x64xbf16, #tpu.memory_space<vmem>>, vector<1x32x64xbf16>
    %122 = vector.shape_cast %121 : vector<1x32x64xbf16> to vector<32x64xbf16>
    %cst_41 = arith.constant dense<0.000000e+00> : vector<16x64xf32>
    %123 = tpu.matmul %120, %122, %cst_41 {dimension_numbers = #tpu.dot_dimension_numbers<[1], [0], [0], [1], [0, 0, 1, 1], [], []>} : vector<16x32xbf16>, vector<32x64xbf16>, vector<16x64xf32> -> vector<16x64xf32>
    %c0_42 = arith.constant 0 : index
    %c0_43 = arith.constant 0 : index
    %c0_44 = arith.constant 0 : index
    %124 = vector.load %arg10[%c0_42, %c0_43, %c0_44] : memref<1x1x64xf32, #tpu.memory_space<vmem>>, vector<1x1x64xf32>
    %125 = vector.shape_cast %124 : vector<1x1x64xf32> to vector<1x64xf32>
    %126 = vector.broadcast %125 : vector<1x64xf32> to vector<16x64xf32>
    %127 = arith.addf %123, %126 : vector<16x64xf32>
    %cst_45 = arith.constant 0.000000e+00 : f32
    %128 = vector.broadcast %cst_45 : f32 to vector<16x64xf32>
    %129 = arith.maximumf %127, %128 : vector<16x64xf32>
    %130 = arith.truncf %129 : vector<16x64xf32> to vector<16x64xbf16>
    %c0_46 = arith.constant 0 : index
    %c0_47 = arith.constant 0 : index
    %c0_48 = arith.constant 0 : index
    %131 = vector.load %arg11[%c0_46, %c0_47, %c0_48] : memref<1x64x32xbf16, #tpu.memory_space<vmem>>, vector<1x64x32xbf16>
    %132 = vector.shape_cast %131 : vector<1x64x32xbf16> to vector<64x32xbf16>
    %cst_49 = arith.constant dense<0.000000e+00> : vector<16x32xf32>
    %133 = tpu.matmul %130, %132, %cst_49 {dimension_numbers = #tpu.dot_dimension_numbers<[1], [0], [0], [1], [0, 0, 1, 1], [], []>} : vector<16x64xbf16>, vector<64x32xbf16>, vector<16x32xf32> -> vector<16x32xf32>
    %c0_50 = arith.constant 0 : index
    %c0_51 = arith.constant 0 : index
    %c0_52 = arith.constant 0 : index
    %134 = vector.load %arg12[%c0_50, %c0_51, %c0_52] : memref<1x1x32xf32, #tpu.memory_space<vmem>>, vector<1x1x32xf32>
    %135 = vector.shape_cast %134 : vector<1x1x32xf32> to vector<1x32xf32>
    %136 = vector.broadcast %135 : vector<1x32xf32> to vector<16x32xf32>
    %137 = arith.addf %133, %136 : vector<16x32xf32>
    %138 = arith.addf %119, %137 : vector<16x32xf32>
    %cst_53 = arith.constant dense<0.000000e+00> : vector<16xf32>
    %139 = vector.multi_reduction <add>, %138, %cst_53 [1] : vector<16x32xf32> to vector<16xf32>
    %140 = vector.shape_cast %139 : vector<16xf32> to vector<16x1xf32>
    %cst_54 = arith.constant 3.200000e+01 : f32
    %141 = vector.broadcast %cst_54 : f32 to vector<16x1xf32>
    %142 = arith.divf %140, %141 : vector<16x1xf32>
    %143 = vector.broadcast %142 : vector<16x1xf32> to vector<16x32xf32>
    %144 = arith.subf %138, %143 : vector<16x32xf32>
    %145 = arith.mulf %144, %144 : vector<16x32xf32>
    %cst_55 = arith.constant dense<0.000000e+00> : vector<16xf32>
    %146 = vector.multi_reduction <add>, %145, %cst_55 [1] : vector<16x32xf32> to vector<16xf32>
    %147 = vector.shape_cast %146 : vector<16xf32> to vector<16x1xf32>
    %cst_56 = arith.constant 3.200000e+01 : f32
    %148 = vector.broadcast %cst_56 : f32 to vector<16x1xf32>
    %149 = arith.divf %147, %148 : vector<16x1xf32>
    %150 = vector.broadcast %142 : vector<16x1xf32> to vector<16x32xf32>
    %151 = arith.subf %138, %150 : vector<16x32xf32>
    %cst_57 = arith.constant 9.99999974E-6 : f32
    %152 = vector.broadcast %cst_57 : f32 to vector<16x1xf32>
    %153 = arith.addf %149, %152 : vector<16x1xf32>
    %154 = math.rsqrt %153 : vector<16x1xf32>
    %155 = vector.broadcast %154 : vector<16x1xf32> to vector<16x32xf32>
    %156 = arith.mulf %151, %155 : vector<16x32xf32>
    %c0_58 = arith.constant 0 : index
    %c0_59 = arith.constant 0 : index
    %c0_60 = arith.constant 0 : index
    %157 = vector.load %arg13[%c0_58, %c0_59, %c0_60] : memref<1x1x32xf32, #tpu.memory_space<vmem>>, vector<1x1x32xf32>
    %158 = vector.shape_cast %157 : vector<1x1x32xf32> to vector<1x32xf32>
    %159 = vector.broadcast %158 : vector<1x32xf32> to vector<16x32xf32>
    %160 = arith.mulf %156, %159 : vector<16x32xf32>
    %c0_61 = arith.constant 0 : index
    %c0_62 = arith.constant 0 : index
    %c0_63 = arith.constant 0 : index
    %161 = vector.load %arg14[%c0_61, %c0_62, %c0_63] : memref<1x1x32xf32, #tpu.memory_space<vmem>>, vector<1x1x32xf32>
    %162 = vector.shape_cast %161 : vector<1x1x32xf32> to vector<1x32xf32>
    %163 = vector.broadcast %162 : vector<1x32xf32> to vector<16x32xf32>
    %164 = arith.addf %160, %163 : vector<16x32xf32>
    %165 = vector.shape_cast %164 : vector<16x32xf32> to vector<2x8x32xf32>
    %c0_64 = arith.constant 0 : index
    %c0_65 = arith.constant 0 : index
    %c0_66 = arith.constant 0 : index
    %166 = vector.load %arg16[%c0_64, %c0_65, %c0_66] : memref<2x8x32xf32, #tpu.memory_space<vmem>>, vector<2x8x32xf32>
    tpu.vector_store %arg16[%c0_64, %c0_65, %c0_66], %165 {strides = array<i32>} : memref<2x8x32xf32, #tpu.memory_space<vmem>>, vector<2x8x32xf32>,
    %c1_i32 = arith.constant 1 : i32
    %167 = arith.cmpi eq, %arg1, %c1_i32 : i32
    %168 = arith.extui %167 : i1 to i32
    %c0_i32_67 = arith.constant 0 : i32
    %169 = arith.cmpi ne, %168, %c0_i32_67 : i32
    scf.if %169 {
      %c0_68 = arith.constant 0 : index
      %c0_69 = arith.constant 0 : index
      %c0_70 = arith.constant 0 : index
      %170 = vector.load %arg16[%c0_68, %c0_69, %c0_70] : memref<2x8x32xf32, #tpu.memory_space<vmem>>, vector<2x8x32xf32>
      %c0_71 = arith.constant 0 : index
      %c0_72 = arith.constant 0 : index
      %c0_73 = arith.constant 0 : index
      %171 = vector.load %arg15[%c0_71, %c0_72, %c0_73] : memref<2x8x32xf32, #tpu.memory_space<vmem>>, vector<2x8x32xf32>
      tpu.vector_store %arg15[%c0_71, %c0_72, %c0_73], %170 {strides = array<i32>} : memref<2x8x32xf32, #tpu.memory_space<vmem>>, vector<2x8x32xf32>,
    } else {
    }
    return
  }
  func.func @transform_0(%arg0: i32, %arg1: i32) -> (i32, i32, i32) {
    %c0_i32 = arith.constant 0 : i32
    %c0_i32_0 = arith.constant 0 : i32
    %c0_i32_1 = arith.constant 0 : i32
    return %arg0, %c0_i32, %c0_i32_0 : i32, i32, i32
  }
  func.func @transform_1(%arg0: i32, %arg1: i32) -> (i32, i32, i32) {
    %c0_i32 = arith.constant 0 : i32
    %c0_i32_0 = arith.constant 0 : i32
    %c0_i32_1 = arith.constant 0 : i32
    return %arg1, %c0_i32, %c0_i32_0 : i32, i32, i32
  }
  func.func @transform_2(%arg0: i32, %arg1: i32) -> (i32, i32, i32) {
    %c0_i32 = arith.constant 0 : i32
    %c0_i32_0 = arith.constant 0 : i32
    %c0_i32_1 = arith.constant 0 : i32
    return %arg1, %c0_i32, %c0_i32_0 : i32, i32, i32
  }
  func.func @transform_3(%arg0: i32, %arg1: i32) -> (i32, i32, i32) {
    %c0_i32 = arith.constant 0 : i32
    %c0_i32_0 = arith.constant 0 : i32
    %c0_i32_1 = arith.constant 0 : i32
    return %arg1, %c0_i32, %c0_i32_0 : i32, i32, i32
  }
  func.func @transform_4(%arg0: i32, %arg1: i32) -> (i32, i32, i32) {
    %c0_i32 = arith.constant 0 : i32
    %c0_i32_0 = arith.constant 0 : i32
    %c0_i32_1 = arith.constant 0 : i32
    return %arg1, %c0_i32, %c0_i32_0 : i32, i32, i32
  }
  func.func @transform_5(%arg0: i32, %arg1: i32) -> (i32, i32, i32) {
    %c0_i32 = arith.constant 0 : i32
    %c0_i32_0 = arith.constant 0 : i32
    %c0_i32_1 = arith.constant 0 : i32
    return %arg1, %c0_i32, %c0_i32_0 : i32, i32, i32
  }
  func.func @transform_6(%arg0: i32, %arg1: i32) -> (i32, i32, i32) {
    %c0_i32 = arith.constant 0 : i32
    %c0_i32_0 = arith.constant 0 : i32
    %c0_i32_1 = arith.constant 0 : i32
    return %arg1, %c0_i32, %c0_i32_0 : i32, i32, i32
  }
  func.func @transform_7(%arg0: i32, %arg1: i32) -> (i32, i32, i32) {
    %c0_i32 = arith.constant 0 : i32
    %c0_i32_0 = arith.constant 0 : i32
    %c0_i32_1 = arith.constant 0 : i32
    return %arg1, %c0_i32, %c0_i32_0 : i32, i32, i32
  }
  func.func @transform_8(%arg0: i32, %arg1: i32) -> (i32, i32, i32) {
    %c0_i32 = arith.constant 0 : i32
    %c0_i32_0 = arith.constant 0 : i32
    %c0_i32_1 = arith.constant 0 : i32
    return %arg1, %c0_i32, %c0_i32_0 : i32, i32, i32
  }
  func.func @transform_9(%arg0: i32, %arg1: i32) -> (i32, i32, i32) {
    %c0_i32 = arith.constant 0 : i32
    %c0_i32_0 = arith.constant 0 : i32
    %c0_i32_1 = arith.constant 0 : i32
    return %arg1, %c0_i32, %c0_i32_0 : i32, i32, i32
  }
  func.func @transform_10(%arg0: i32, %arg1: i32) -> (i32, i32, i32) {
    %c0_i32 = arith.constant 0 : i32
    %c0_i32_0 = arith.constant 0 : i32
    %c0_i32_1 = arith.constant 0 : i32
    return %arg1, %c0_i32, %c0_i32_0 : i32, i32, i32
  }
  func.func @transform_11(%arg0: i32, %arg1: i32) -> (i32, i32, i32) {
    %c0_i32 = arith.constant 0 : i32
    %c0_i32_0 = arith.constant 0 : i32
    %c0_i32_1 = arith.constant 0 : i32
    return %arg1, %c0_i32, %c0_i32_0 : i32, i32, i32
  }
  func.func @transform_12(%arg0: i32, %arg1: i32) -> (i32, i32, i32) {
    %c0_i32 = arith.constant 0 : i32
    %c0_i32_0 = arith.constant 0 : i32
    %c0_i32_1 = arith.constant 0 : i32
    return %arg1, %c0_i32, %c0_i32_0 : i32, i32, i32
  }
  func.func @transform_13(%arg0: i32, %arg1: i32) -> (i32, i32, i32) {
    %c0_i32 = arith.constant 0 : i32
    %c0_i32_0 = arith.constant 0 : i32
    %c0_i32_1 = arith.constant 0 : i32
    return %arg0, %c0_i32, %c0_i32_0 : i32, i32, i32
  }
}

</mosaic_0001>

<bundles_post_ra>
// kernel: transformer_forward.5
= control target key start
LH: loop header
LB: loop body
LE: loop exit
PB: predicated region body
PF: predicated region fallthrough
CT: control target
= control target key end

     0   :  { %7 = vsyncpa [#allocation3], 0  ;;  %s610_s0 = inlined_call_operand.vmem [shape: f32[8,2,32], index: 0, kind: input, shape index: {}]   ;;  %s611_s1 = inlined_call_operand.vmem [shape: f32[8,2,1], index: 1, kind: input, shape index: {}]   ;;  %s612_s2 = inlined_call_operand.hbm [shape: f32[8,2,32], index: 2, kind: output, shape index: {}]  }
   0x1   :  { %9 = vsyncpa [#allocation3 + $0x1], 0  ;;  %s507_s9 = smov 0   ;;  %s509_s10 = smov 0  }
   0x2   :  { %s511_s11 = smov 0   ;;  %s513_s12 = smov 0  }
   0x3   :  { %s515_s13 = smov 0   ;;  %s517_s14 = smov 0  }
   0x4 LB: > { %s333_s15 = sadd.s32 4294967295, %s487_s14   ;;  %s334_s16 = sadd.s32 4294967294, %s487_s14   ;;  %s487_s14 = sphi %s517_s14, %s15_s14   ;;  %s483_s13 = sphi %s515_s13, %s619_s13   ;;  %s479_s12 = sphi %s513_s12, %s618_s12   ;;  %s475_s11 = sphi %s511_s11, %s617_s11   ;;  %s471_s10 = sphi %s509_s10, %s616_s10   ;;  %s467_s9 = sphi %s507_s9, %s615_s9  }
   0x5   : > { %s27_s17 = sadd.s32 1, %s483_s13  ;;  %s90_s18 = sadd.s32 1, %s475_s11 }
   0x6   : > { %p29_p0 = scmp.ge.s32.totalorder %s27_s17, 2  ;;  %p100_p1 = scmp.ne.s32.totalorder %s475_s11, %s471_s10 }
   0x7   : > { %p101_p2 = scmp.eq.s32.totalorder %s333_s15, 1  ;;  %p106_p3 = scmp.ne.s32.totalorder %s471_s10, %s467_s9 }
   0x8   : > { %s621_s17 = smov (%p29_p0, %s27_s17), 0  ;;  %p107_p5 = scmp.eq.s32.totalorder %s334_s16, 1 }
   0x9   : > { %p547_p4 = por %p101_p2, %p100_p1  ;;  %s85_s20 = ssub.s32 %s483_s13, %s621_s17 }
   0xa   : > { %p337_p6 = scmp.ge.s32.totalorder %s487_s14, 1  ;;  %p88_p7 = scmp.eq.s32.totalorder %s85_s20, 0 }
   0xb   : > { %p554_p8 = por %p107_p5, %p106_p3  ;;  %p146_p9 = scmp.lt.s32.totalorder %s487_s14, 3 }
   0xc   : > { %s560_s22 = scalar_select %p88_p7, %s475_s11, %s90_s18  }
   0xd   : > { %p147_p10 = pnand %p337_p6, %p146_p9 }
   0xe   : > { %s339_s23 = sshll.u32 (!%p147_p10), %s479_s12, 2  ;;  %s173_s28 = sand.u32 (!%p147_p10), 1, %s471_s10  }
   0xf   : > { %150 = sbr.rel (%p147_p10) target bundleno = 154 (0x9a), region = 28  ;;  %p177_p11 = scmp.lt.s32.totalorder (!%p147_p10), %s339_s23, 7 }
  0x10   : > { %s338_s4 = sshll.u32 (!%p147_p10), %s173_s28, 3  ;;  %s348_s5 = sshll.u32 (!%p147_p10), %s479_s12, 3 }
  0x11   : > { %s175_s6 = scalar_lea.vmem (!%p147_p10), [#allocation2], %s338_s4  ;;  %s242_s15 = scalar_lea.hbm (!%p147_p10), %s612_s2, %s348_s5 }
  0x12   : > { %s243_s16 = sshll.u32 (!%p147_p10), %s175_s6, 4  ;;  %s245_s18 = sshll.u32 (!%p147_p10), %s242_s15, 4  ;;  %s244_s16 = int_to_ptr.vmem [resolvable:$true] %s243_s16  ;;  %s246_s18 = int_to_ptr.hbm [resolvable:$true] %s245_s18 }
  0x13   : > { %s230_s12 = scalar_lea.sflag (!%p147_p10), [#allocation3], %s173_s28  ;;  %s423_s20 = sshra.s32 (!%p147_p10), %s246_s18, 4  ;;  %s424_s20 = int_to_ptr.hbm [resolvable:$true] %s423_s20 }
  0x14   : > { %v489_v0 = vmov 0   ;;  %s623_s23 = smov (!%p177_p11, %s339_s23), 7  ;;  %vm224_vm0 = vcmask 254976   ;;  %s429_s26 = scalar_lea.hbm %s612_s2, 16 }
  0x15   : > { %408 = vset.pattern.permute.xlu1 %v489_v0  ;;  %407 = vset.pattern.permute.xlu0 %v489_v0  ;;  %s340_s24 = sshll.u32 %s623_s23, 1  ;;  %s425_s23 = scalar_lea.hbm %s424_s20, 8 }
  0x16   : > { %s189_s27 = scalar_lea.vmem %s611_s1, %s340_s24  ;;  %s183_s3 = scalar_lea.vmem %s610_s0, %s340_s24 }
  0x17   : > { %v198_v1 = vld [vmem:[%s189_s27 + $0x4] sm:$0x3]  ;;  %v196_v2 = vld [vmem:[%s189_s27] sm:$0x3]  ;;  %v199_v3 = vld [vmem:[%s189_s27 + $0x6] sm:$0x3]  ;;  %p426_p12 = scmp.ne.s32.totalorder %s424_s20, %s425_s23  ;;  %p430_p1 = scmp.lt.s32.totalorder %s424_s20, %s612_s2 }
  0x18   : > { %212 = vperm.xlu1 %408, %v198_v1   ;;  %202 = vperm.xlu0 %407, %v196_v2   ;;  %v197_v4 = vld [vmem:[%s189_s27 + $0x2] sm:$0x3]  ;;  %v194_v5 = vld [vmem:[%s183_s3 + $0x4] sm:$0x3]  ;;  %v192_v6 = vld [vmem:[%s183_s3] sm:$0x3]  ;;  %p431_p2 = scmp.lt.s32.totalorder %s429_s26, %s425_s23 }
  0x19   : > { %v195_v11 = vld [vmem:[%s183_s3 + $0x6] sm:$0x3]  ;;  %v193_v12 = vld [vmem:[%s183_s3 + $0x2] sm:$0x3]  ;;  %p427_p13 = pnand %p426_p12, %p547_p4 }
  0x1a   : > { %p432_p3 = por %p431_p2, %p430_p1 }
  0x1b   : > { %p428_p0 = pneg %p427_p13 }
  0x1d   : > { %p433_p5 = pnand %p432_p3, %p428_p0 }
  0x20   : > { %217 = vperm.xlu1 %408, %v199_v3   ;;  %207 = vperm.xlu0 %407, %v197_v4  }
  0x8a   : > { %v213_v7 = vpop.permute.xlu1 %212  ;;  %v203_v8 = vpop.permute.xlu0 %202 }
  0x8b   : > { %v222_v9 = vsub.f32 %v194_v5, %v213_v7  ;;  %v220_v10 = vsub.f32 %v192_v6, %v203_v8 }
  0x8d   : > { %227 = vst.msk [vmem:[%s175_s6 + $0x4] sm:$0x3] %vm224_vm0, %v222_v9 }
  0x8e   : > { %225 = vst.msk [vmem:[%s175_s6] sm:$0x3] %vm224_vm0, %v220_v10 }
  0x92   : > { %v218_v13 = vpop.permute.xlu1 %217  ;;  %v208_v14 = vpop.permute.xlu0 %207 }
  0x93   : > { %v223_v15 = vsub.f32 %v195_v11, %v218_v13  ;;  %v221_v16 = vsub.f32 %v193_v12, %v208_v14 }
  0x95   : > { %228 = vst.msk [vmem:[%s175_s6 + $0x6] sm:$0x3] %vm224_vm0, %v223_v15 }
  0x96   : > { %226 = vst.msk [vmem:[%s175_s6 + $0x2] sm:$0x3] %vm224_vm0, %v221_v16 }
  0x97   : > { %436 = shalt.err (!%p433_p5)
}
  0x98   : > { %s490_s28 = smov 32   ;;  %s491_s30 = smov 2  }
  0x99   : > { %349 = dma.vmem_to_hbm [thread:$0]  (%p547_p4), %s244_s16, 128, %s246_s18, %s230_s12, %s490_s28, %s490_s28, %s491_s30  }
  0x9a PF: > { %p355_p6 = scmp.ge.s32.totalorder %s487_s14, 2  ;;  %s260_s3 = sand.u32 1, %s467_s9  }
  0x9b   : > { %s261_s4 = scalar_lea.sflag [#allocation3], %s260_s3 }
  0x9c   : > { %p352_p7 = pnand %p355_p6, %p554_p8 }
  0x9e   : > { %p353_p9 = pneg %p352_p7 }
  0xa0   : > { %462 = dma.done.wait (%p353_p9), %s261_s4, 128  }
  0xa1   : > { %464 = vsyncadd (%p353_p9), %s261_s4, 4294967168  ;;  %s15_s14 = sadd.s32 1, %s487_s14   ;;  %s615_s9 = smov %s471_s10 }
  0xa2   : > { %p12_p10 = scmp.ge.s32.totalorder %s15_s14, 4   ;;  %s616_s10 = smov %s475_s11 }
  0xa3   : > { %s617_s11 = smov %s560_s22  ;;  %s618_s12 = smov %s483_s13 }
  0xa4   : > { %s619_s13 = smov %s621_s17  ;;  %14 = sbr.rel (!%p12_p10) target bundleno = 4 (0x4), region = 66 }
  0xa9   :  { %267 = vsyncpa [#allocation3], 1 }
  0xaa   :  { %269 = vsyncpa [#allocation3 + $0x1], 1 }

// kernel: transformer_forward.4
= control target key start
LH: loop header
LB: loop body
LE: loop exit
PB: predicated region body
PF: predicated region fallthrough
CT: control target
= control target key end

     0   :  { %s635_s15 = smov 0   ;;  %s637_s16 = smov 0   ;;  %s692_s0 = inlined_call_operand.vmem [shape: f32[8,2,32], index: 0, kind: input, shape index: {}]   ;;  %s693_s1 = inlined_call_operand.vmem [shape: bf16[32,32], index: 1, kind: input, shape index: {}]   ;;  %s694_s2 = inlined_call_operand.vmem [shape: f32[1,32], index: 2, kind: input, shape index: {}]   ;;  %s695_s3 = inlined_call_operand.vmem [shape: f32[8,2,32], index: 3, kind: output, shape index: {0}]   ;;  %s696_s4 = inlined_call_operand.vmem [shape: f32[8,2,1], index: 4, kind: output, shape index: {1}]  }
   0x1   :  { %s639_s17 = smov 0  }
   0x2 LB: > { %s27_s18 = sadd.s32 1, %s601_s16  ;;  %p528_p0 = scmp.ge.s32.totalorder %s605_s17, 1  ;;  %s605_s17 = sphi %s639_s17, %s15_s17   ;;  %s601_s16 = sphi %s637_s16, %s698_s16   ;;  %s597_s15 = sphi %s635_s15, %s697_s15  }
   0x3   : > { %p29_p1 = scmp.ge.s32.totalorder %s27_s18, 2  ;;  %p197_p2 = scmp.lt.s32.totalorder %s605_s17, 3 }
   0x5   : > { %s700_s18 = smov (%p29_p1, %s27_s18), 0  ;;  %p198_p3 = pnand %p528_p0, %p197_p2 }
   0x6   : > { %s529_s21 = sshll.u32 (!%p198_p3), %s597_s15, 2 }
   0x7   : > { %201 = sbr.rel (%p198_p3) target bundleno = 545 (0x221), region = 32  ;;  %p239_p4 = scmp.lt.s32.totalorder (!%p198_p3), %s529_s21, 7 }
   0xc   : > { %v547_v0 = vld [vmem:[%s693_s1 + $0x8] sm:$0xff]  ;;  %v546_v1 = vld [vmem:[%s693_s1] sm:$0xff]  ;;  %s702_s21 = smov (!%p239_p4, %s529_s21), 7  ;;  %vm312_vm0 = vcmask 261120   ;;  %vm271_vm1 = vcmask 7168   ;;  %vm336_vm2 = vcmask 254976  }
   0xd   : > { %322 = vmatpush.bf16.msra.mxu0 %v547_v0  ;;  %s659_s24 = sshll.u32 %s702_s21, 1  ;;  %v607_v8 = vmov -1e+30   ;;  %v576_v9 = vld [vmem:[%s694_s2] ss:$0 sm:$0xff]  ;;  %v608_v17 = vmov 0  }
   0xe   : > { %s242_s27 = scalar_lea.vmem %s692_s0, %s659_s24  ;;  %272 = vst.msk [vmem:[#allocation2] sm:$0xff] %vm271_vm1, %v607_v8  ;;  %s258_s6 = scalar_lea.vmem %s695_s3, %s659_s24  ;;  %575 = vset.pattern.permute.xlu0 %v608_v17  ;;  %v609_v18 = vmov 0.0   ;;  %vm381_vm3 = vcmask 1024  }
   0xf   : > { %v274_v2 = vld [vmem:[%s242_s27] sm:$0x3]  ;;  %v275_v3 = vld [vmem:[%s242_s27 + $0x2] sm:$0x3]  ;;  %v276_v4 = vld [vmem:[%s242_s27 + $0x4] sm:$0x3]  ;;  %s264_s9 = scalar_lea.vmem %s696_s4, %s659_s24 }
  0x10   : > { %v277_v5 = vld [vmem:[%s242_s27 + $0x6] sm:$0x3]  ;;  %282 = vst [vmem:[#allocation1] ss:$4 sm:$0xff] %v274_v2 }
  0x11   : > { %323 = vmatpush.bf16.msra.mxu0 %v546_v1  ;;  %284 = vst [vmem:[#allocation1 + $0x1] ss:$4 sm:$0xff] %v275_v3 }
  0x12   : > { %286 = vst [vmem:[#allocation1 + $0x2] ss:$4 sm:$0xff] %v276_v4 }
  0x13   : > { %288 = vst [vmem:[#allocation1 + $0x3] ss:$4 sm:$0xff] %v277_v5 }
  0x14   : > { %273 = vst.msk [vmem:[#allocation3] sm:$0xff] %vm271_vm1, %v609_v18 }
  0x15   : > { %v344_v19 = vld [vmem:[#allocation2] sm:$0xff] }
  0x1a   : > { %v289_v6 = vld.sshfl [vmem:[#allocation1] sm:$0xff pattern:$0x73625140] }
  0x1b   : > { %v291_v7 = vpack.c.bf16 %v289_v6, %v289_v6  ;;  %v346_v30 = vld [vmem:[#allocation3] sm:$0xff] }
  0x1d   : > { %543 = vmatmul.msk.bf16.vlgmr.msra.gmra.mxu0 %vm312_vm0, %v291_v7 }
  0x9a   : > { %v325_v10 = vpop.f32.mrf.mxu0 }
  0x9b   : > { %v326_v11 = vadd.f32 %v576_v9, %v325_v10 }
  0x9d   : > { %v330_v12 = vrot.slane %v326_v11, 2  ;;  %v331_v13 = vrot.slane %v326_v11, 4  ;;  %337 = vst.msk [vmem:[%s258_s6] sm:$0x3] %vm336_vm2, %v326_v11  ;;  %v341_v14 = vsel %vm312_vm0, %v326_v11, -inf  ;;  %v332_v15 = vrot.slane %v326_v11, 6 }
  0x9e   : > { %342 = vmax.xlane.f32.xlu0 %v341_v14 }
  0x9f   : > { %338 = vst.msk [vmem:[%s258_s6 + $0x2] sm:$0x3] %vm336_vm2, %v330_v12 }
  0xa0   : > { %339 = vst.msk [vmem:[%s258_s6 + $0x4] sm:$0x3] %vm336_vm2, %v331_v13 }
  0xa1   : > { %340 = vst.msk [vmem:[%s258_s6 + $0x6] sm:$0x3] %vm336_vm2, %v332_v15 }
  0xa2   : > { %v327_v16 = vpop.f32.mrf.mxu0 }
 0x111   : > { %v343_v20 = vpop.xlane.xlu0 %342 }
 0x112   : > { %v345_v21 = vmax.f32 %v344_v19, %v343_v20 }
 0x114   : > { %v347_v22 = vsub.f32 %v344_v19, %v345_v21  ;;  %365 = vst.msk [vmem:[#allocation2] sm:$0xff] %vm271_vm1, %v345_v21  ;;  %353 = vperm.xlu0 %575, %v345_v21  }
 0x116   : > { %v348_v28 = vmul.f32 1.442695, %v347_v22 }
 0x11b   : > { %v369_v37 = vld [vmem:[#allocation2] sm:$0xff] }
 0x186   : > { %v354_v23 = vpop.permute.xlu0 %353 }
 0x187   : > { %v356_v24 = vsub.f32 %v326_v11, %v354_v23 }
 0x189   : > { %v357_v25 = vmul.f32 1.442695, %v356_v24 }
 0x18b   : > { %577 = vpow2.f32 %v357_v25 }
 0x18c   : > { %579 = vpow2.f32 %v348_v28 }
 0x191   : > { %v578_v26 = vpop.eup %577 }
 0x192   : > { %v359_v27 = vsel %vm312_vm0, %v578_v26, 0.0  ;;  %v580_v29 = vpop.eup %579 }
 0x193   : > { %360 = vadd.xlane.f32.xlu1 %v359_v27  ;;  %v350_v31 = vmul.f32 %v580_v29, %v346_v30 }
 0x206   : > { %v361_v32 = vpop.xlane.xlu1 %360 }
 0x207   : > { %v362_v33 = vadd.f32 %v361_v32, %v350_v31 }
 0x209   : > { %364 = vst.msk [vmem:[#allocation3] sm:$0xff] %vm271_vm1, %v362_v33 }
 0x210   : > { %v370_v34 = vld [vmem:[#allocation3] sm:$0xff] }
 0x211   : > { %581 = vlog2.f32 %v370_v34 }
 0x217   : > { %v582_v35 = vpop.eup %581 }
 0x218   : > { %v372_v36 = vmul.f32 0.6931472, %v582_v35 }
 0x21a   : > { %v373_v38 = vadd.f32 %v372_v36, %v369_v37 }
 0x21c   : > { %v375_v39 = vrot.slane %v373_v38, 2  ;;  %v376_v40 = vrot.slane %v373_v38, 4  ;;  %382 = vst.msk [vmem:[%s264_s9] sm:$0x3] %vm381_vm3, %v373_v38  ;;  %v377_v41 = vrot.slane %v373_v38, 6 }
 0x21e   : > { %383 = vst.msk [vmem:[%s264_s9 + $0x2] sm:$0x3] %vm381_vm3, %v375_v39 }
 0x21f   : > { %384 = vst.msk [vmem:[%s264_s9 + $0x4] sm:$0x3] %vm381_vm3, %v376_v40 }
 0x220   : > { %385 = vst.msk [vmem:[%s264_s9 + $0x6] sm:$0x3] %vm381_vm3, %v377_v41 }
 0x221 PF: > { %s15_s17 = sadd.s32 1, %s605_s17   ;;  %s697_s15 = smov %s601_s16 }
 0x222   : > { %p12_p5 = scmp.ge.s32.totalorder %s15_s17, 4   ;;  %s698_s16 = smov %s700_s18 }
 0x224   :  { %14 = sbr.rel (!%p12_p5) target bundleno = 2 (0x2), region = 91 }

// kernel: transformer_forward.3
= control target key start
LH: loop header
LB: loop body
LE: loop exit
PB: predicated region body
PF: predicated region fallthrough
CT: control target
= control target key end

     0   :  { %s2928_s25 = smov 0   ;;  %s2930_s26 = smov 0   ;;  %s3610_s0 = inlined_call_operand.vmem [shape: f32[2,8,32], index: 0, kind: input, shape index: {}]   ;;  %s3611_s1 = inlined_call_operand.vmem [shape: bf16[2,32,96], index: 1, kind: input, shape index: {}]   ;;  %s3612_s2 = inlined_call_operand.vmem [shape: f32[2,1,96], index: 2, kind: input, shape index: {}]   ;;  %s3613_s3 = inlined_call_operand.vmem [shape: bf16[2,32,32], index: 3, kind: input, shape index: {}]   ;;  %s3614_s4 = inlined_call_operand.vmem [shape: f32[2,1,32], index: 4, kind: input, shape index: {}]   ;;  %s3615_s5 = inlined_call_operand.vmem [shape: f32[2,1,32], index: 5, kind: input, shape index: {}]   ;;  %s3616_s6 = inlined_call_operand.vmem [shape: f32[2,1,32], index: 6, kind: input, shape index: {}]   ;;  %s3617_s7 = inlined_call_operand.vmem [shape: bf16[2,32,64], index: 7, kind: input, shape index: {}]   ;;  %s3618_s8 = inlined_call_operand.vmem [shape: f32[2,1,64], index: 8, kind: input, shape index: {}]   ;;  %s3619_s9 = inlined_call_operand.vmem [shape: bf16[2,64,32], index: 9, kind: input, shape index: {}]   ;;  %s3620_s10 = inlined_call_operand.vmem [shape: f32[2,1,32], index: 10, kind: input, shape index: {}]   ;;  %s3621_s11 = inlined_call_operand.vmem [shape: f32[2,1,32], index: 11, kind: input, shape index: {}]   ;;  %s3622_s12 = inlined_call_operand.vmem [shape: f32[2,1,32], index: 12, kind: input, shape index: {}]   ;;  %s3623_s13 = inlined_call_operand.vmem [shape: f32[2,8,32], index: 13, kind: output, shape index: {}]  }
   0x1   :  { %3628 = sst [smem:[#allocation6_spill]] %s3610_s0  ;;  %s2932_s27 = smov 0  }
   0x2   :  { %3629 = sst [smem:[#allocation7_spill]] %s3611_s1 }
   0x3   :  { %3630 = sst [smem:[#allocation8_spill]] %s3612_s2 }
   0x4   :  { %3631 = sst [smem:[#allocation9_spill]] %s3613_s3 }
   0x5   :  { %3632 = sst [smem:[#allocation10_spill]] %s3623_s13 }
   0x6 LB: > { %3633 = sst [smem:[#allocation3_spill]] %s2841_s26  ;;  %s32_s28 = sadd.s32 1, %s2841_s26  ;;  %s2845_s27 = sphi %s2932_s27, %s23_s27   ;;  %s2841_s26 = sphi %s2930_s26, %s3648_s26   ;;  %s2837_s25 = sphi %s2928_s25, %s3647_s25  }
   0x7   : > { %3634 = sst [smem:[#allocation4_spill]] %s2845_s27  ;;  %p2592_p0 = scmp.ge.s32.totalorder %s2845_s27, 1 }
   0x8   : > { %p33_p1 = scmp.ge.s32.totalorder %s32_s28, 2  ;;  %p504_p2 = scmp.lt.s32.totalorder %s2845_s27, 3 }
   0xa   : > { %s3650_s28 = smov (%p33_p1, %s32_s28), 0  ;;  %p505_p3 = pnand %p2592_p0, %p504_p2 }
   0xb   : > { %3635 = sst [smem:[#allocation5_spill]] %s3650_s28  ;;  %p598_p4 = scmp.lt.s32.totalorder (!%p505_p3), %s2837_s25, 1 }
   0xc   : > { %508 = sbr.rel (%p505_p3) target bundleno = 2550 (0x9f6), region = 72  ;;  %s3636_s2 = sld [smem:[#allocation8_spill]] (!%p505_p3) }
   0xd   : > { %s3637_s1 = sld [smem:[#allocation7_spill]] (!%p505_p3)  ;;  %p2601_p5 = scmp.ne.s32.totalorder (!%p505_p3), %s2837_s25, 0 }
   0xe   : > { %s3638_s3 = sld [smem:[#allocation9_spill]] (!%p505_p3) }
  0x11   : > { %s2950_s29 = scalar_select %p598_p4, %s2837_s25, 1 }
  0x12   : > { %s3639_s23 = sld [smem:[#allocation6_spill]] (!%p2601_p5) }
  0x13   : > { %s2667_s30 = sshll.u32 %s2950_s29, 4  ;;  %s605_s16 = scalar_lea.vmem %s3636_s2, %s2950_s29 }
  0x14   : > { %s602_s19 = scalar_lea.vmem %s3637_s1, %s2667_s30  ;;  %s2963_s22 = scalar_lea.vmem %s3638_s3, %s2667_s30 }
  0x15   : > { %s2980_s18 = scalar_lea.vmem %s3617_s7, %s2667_s30  ;;  %s627_s1 = scalar_lea.vmem %s3618_s8, %s2950_s29 }
  0x16   : > { %s2670_s3 = sshll.u32 %s2950_s29, 5  ;;  %s635_s0 = scalar_lea.vmem %s3620_s10, %s2950_s29 }
  0x17   : > { %s2990_s28 = scalar_lea.vmem %s3619_s9, %s2670_s3  ;;  %s638_s2 = scalar_lea.vmem %s3621_s11, %s2950_s29 }
  0x18   : > { %s641_s13 = scalar_lea.vmem %s3622_s12, %s2950_s29  ;;  %652 = sbr.rel (%p2601_p5) target bundleno = 32 (0x20), region = 76 }
  0x1d   : > { %v653_v0 = vld [vmem:[%s3639_s23] sm:$0xff]  ;;  %vm655_vm0 = vcmask 261120   ;;  %v654_v1 = vld [vmem:[%s3639_s23 + $0x8] sm:$0xff] }
  0x1e   : > { %656 = vst.msk [vmem:[#allocation2] sm:$0xff] %vm655_vm0, %v653_v0 }
  0x1f   : > { %657 = vst.msk [vmem:[#allocation2 + $0x8] sm:$0xff] %vm655_vm0, %v654_v1 }
  0x20 PF: > { %v2672_v2 = vld [vmem:[%s602_s19 + $0x8] sm:$0xff]  ;;  %v2671_v3 = vld [vmem:[%s602_s19] sm:$0xff]  ;;  %vm681_vm1 = vcmask 261120   ;;  %s2847_s15 = smov 104   ;;  %s2848_s26 = smov 120   ;;  %vm717_vm2 = vcmask 1047556  }
  0x21   : > { %691 = vmatpush.bf16.msra.mxu0 %v2672_v2  ;;  %v2771_v7 = vld [vmem:[%s605_s16] ss:$0 sm:$0xff]  ;;  %s2849_s27 = smov 112   ;;  %s2850_s19 = smov 96   ;;  %v2852_v20 = vmov 1983009808  }
  0x22   : > { %s2851_s16 = smov 64   ;;  %v722_v21 = vunpack.c.l.s4 %v2852_v20  ;;  %v2853_v28 = vmov 1934713408   ;;  %vm1086_vm3 = vcmask 64512   ;;  %vm1224_vm4 = vcmask 1043456   ;;  %s2854_s14 = smov 16  }
  0x23   : > { %v746_v29 = vunpack.c.l.s4 %v2853_v28  ;;  %s2855_s30 = smov 8   ;;  %s2856_s17 = smov 24   ;;  %vm1421_vm6 = vcmask 130048   ;;  %vm1423_vm7 = vcmask 195584   ;;  %vm2317_vm15 = vcmask 523264  }
  0x24   : > { %v3030_v25 = vunpack.c.0.s8 %v722_v21  ;;  %s3642_s21 = scalar_lea.vmem %s3614_s4, %s2950_s29  ;;  %s3643_s24 = scalar_lea.vmem %s3615_s5, %s2950_s29 }
  0x25   : > { %v658_v4 = vld [vmem:[#allocation2] sm:$0xff]  ;;  %692 = vmatpush.bf16.msra.mxu0 %v2671_v3  ;;  %v3041_v45 = vunpack.c.0.s8 %v746_v29  ;;  %p2662_p6 = scmp.ne.s32.totalorder %s2837_s25, 1 }
  0x26   : > { %v659_v5 = vld [vmem:[#allocation2 + $0x8] sm:$0xff] }
  0x27   : > { %v660_v6 = vpack.c.bf16 %v659_v5, %v658_v4 }
  0x29   : > { %2610 = vmatmul.msk.bf16.vlgmr.msra.gmra.mxu0 %vm681_vm1, %v660_v6 }
  0xa6   : > { %v694_v8 = vpop.f32.mrf.mxu0 }
  0xa7   : > { %v695_v9 = vadd.f32 %v2771_v7, %v694_v8 }
  0xa9   : > { %832 = vrot.lane.b32.xlu1 %v695_v9, %s2847_s15  ;;  %828 = vrot.lane.b32.xlu0 %v695_v9, %s2848_s26  ;;  %v699_v10 = vmul.f32 0.35355338, %v695_v9 }
  0xab   : > { %v719_v27 = vrot.slane %v699_v10, 4 }
  0xae   : > { %v696_v16 = vpop.f32.mrf.mxu0 }
  0xaf   : > { %v3020_v17 = vadd.f32 %v2771_v7, %v696_v16 }
  0xb1   : > { %830 = vrot.lane.b32.xlu0 %v695_v9, %s2849_s27 }
  0xb9   : > { %710 = vrot.lane.b32.xlu0 %v699_v10, %s2849_s27 }
 0x11b   : > { %v829_v11 = vpop.permute.xlu0 %828  ;;  %v833_v13 = vpop.permute.xlu1 %832 }
 0x11c   : > { %v2716_v12 = vpack.i.bf16 %v829_v11, %v695_v9 }
 0x11e   : > { %2717 = vrot.lane.b32.xlu1 %v2716_v12, %s2850_s19 }
 0x123   : > { %v831_v14 = vpop.permute.xlu0 %830 }
 0x124   : > { %v2731_v15 = vpack.i.bf16 %v833_v13, %v831_v14 }
 0x126   : > { %2722 = vrot.lane.b32.xlu2 %v2731_v15, %s2850_s19  ;;  %713 = vrot.lane.b32.xlu1 %v699_v10, %s2847_s15 }
 0x127   : > { %2732 = vrot.lane.b32.xlu0 %v2731_v15, %s2851_s16 }
 0x12b   : > { %v711_v22 = vpop.permute.xlu0 %710 }
 0x12c   : > { %v716_v26 = vrot.slane %v711_v22, 4  ;;  %v720_v35 = vsel %vm717_vm2, %v711_v22, %v719_v27 }
 0x12d   : > { %v728_v44 = vperm.slane %v720_v35, %v3030_v25 }
 0x12e   : > { %1546 = vrot.lane.b32.xlu1 %v3020_v17, %s2848_s26  ;;  %707 = vrot.lane.b32.xlu2 %v699_v10, %s2848_s26  ;;  %v718_v40 = vsel %vm717_vm2, %v716_v26, %v699_v10 }
 0x12f   : > { %v724_v52 = vperm.slane %v718_v40, %v3030_v25  ;;  %v755_v2 = vrot.slane %v728_v44, 4 }
 0x131   : > { %v743_v14 = vrot.slane %v724_v52, 4 }
 0x136   : > { %1548 = vrot.lane.b32.xlu1 %v3020_v17, %s2849_s27  ;;  %2727 = vrot.lane.b32.xlu2 %v2716_v12, %s2851_s16 }
 0x13e   : > { %1550 = vrot.lane.b32.xlu1 %v3020_v17, %s2847_s15 }
 0x180   : > { %v2723_v18 = vpop.permute.xlu2 %2722 }
 0x181   : > { %v2725_v23 = vunpack.i.h.bf16 %v2723_v18  ;;  %v2724_v24 = vunpack.i.l.bf16 %v2723_v18 }
 0x183   : > { %v858_v31 = vrot.slane %v2725_v23, 4  ;;  %v846_v32 = vrot.slane %v2724_v24, 4 }
 0x188   : > { %v708_v19 = vpop.permute.xlu2 %707 }
 0x189   : > { %v731_v53 = vrot.slane %v708_v19, 4 }
 0x190   : > { %v2718_v30 = vpop.permute.xlu1 %2717  ;;  %v3038_v43 = vpop.permute.xlu2 %2727 }
 0x191   : > { %v2720_v33 = vunpack.i.h.bf16 %v2718_v30  ;;  %v2719_v34 = vunpack.i.l.bf16 %v2718_v30  ;;  %v2730_v54 = vunpack.i.h.bf16 %v3038_v43  ;;  %v2729_v55 = vunpack.i.l.bf16 %v3038_v43 }
 0x193   : > { %v860_v36 = vrot.slane %v2720_v33, 4  ;;  %v847_v37 = vsel %vm717_vm2, %v846_v32, %v2719_v34  ;;  %v848_v38 = vrot.slane %v2719_v34, 4  ;;  %v859_v39 = vsel %vm717_vm2, %v858_v31, %v2720_v33 }
 0x194   : > { %v853_v41 = vperm.slane %v847_v37, %v3030_v25  ;;  %v865_v42 = vperm.slane %v859_v39, %v3030_v25  ;;  %v982_v16 = vrot.slane %v2730_v54, 4  ;;  %v970_v18 = vrot.slane %v2729_v55, 4 }
 0x195   : > { %v849_v46 = vsel %vm717_vm2, %v2724_v24, %v848_v38  ;;  %v861_v47 = vsel %vm717_vm2, %v2725_v23, %v860_v36 }
 0x196   : > { %v857_v48 = vperm.slane %v849_v46, %v3030_v25  ;;  %v869_v49 = vperm.slane %v861_v47, %v3030_v25  ;;  %v870_v50 = vrot.slane %v865_v42, 4  ;;  %v872_v51 = vrot.slane %v853_v41, 4 }
 0x198   : > { %v871_v56 = vsel %vm717_vm2, %v870_v50, %v853_v41  ;;  %v873_v57 = vsel %vm717_vm2, %v865_v42, %v872_v51  ;;  %v882_v58 = vrot.slane %v869_v49, 4  ;;  %v884_v59 = vrot.slane %v857_v48, 4  ;;  %v714_v60 = vpop.permute.xlu1 %713 }
 0x199   : > { %v877_v61 = vperm.slane %v871_v56, %v3041_v45  ;;  %v881_v62 = vperm.slane %v873_v57, %v3041_v45  ;;  %v729_v63 = vrot.slane %v714_v60, 4  ;;  %v732_v0 = vsel %vm717_vm2, %v714_v60, %v731_v53  ;;  %v2733_v1 = vpop.permute.xlu0 %2732 }
 0x19a   : > { %v885_v3 = vsel %vm717_vm2, %v869_v49, %v884_v59  ;;  %v740_v4 = vperm.slane %v732_v0, %v3030_v25  ;;  %v2735_v5 = vunpack.i.h.bf16 %v2733_v1  ;;  %v883_v6 = vsel %vm717_vm2, %v882_v58, %v857_v48 }
 0x19b   : > { %v893_v7 = vperm.slane %v885_v3, %v3041_v45  ;;  %v894_v8 = vrot.slane %v877_v61, 4  ;;  %v896_v9 = vrot.slane %v881_v62, 4  ;;  %v730_v10 = vsel %vm717_vm2, %v729_v63, %v708_v19 }
 0x19c   : > { %v753_v11 = vrot.slane %v740_v4, 4  ;;  %v756_v12 = vsel %vm717_vm2, %v740_v4, %v755_v2  ;;  %v980_v13 = vrot.slane %v2735_v5, 4  ;;  %v889_v20 = vperm.slane %v883_v6, %v3041_v45 }
 0x19d   : > { %v900_v15 = vrot.slane %v893_v7, 4  ;;  %v895_v21 = vsel %vm717_vm2, 0.0, %v894_v8  ;;  %v736_v22 = vperm.slane %v730_v10, %v3030_v25  ;;  %v897_v24 = vsel %vm717_vm2, 0.0, %v896_v9 }
 0x19e   : > { %v754_v23 = vsel %vm717_vm2, %v753_v11, %v728_v44  ;;  %v764_v26 = vperm.slane %v756_v12, %v3041_v45  ;;  %v2734_v27 = vunpack.i.l.bf16 %v2733_v1  ;;  %v981_v31 = vsel %vm717_vm2, %v980_v13, %v2730_v54 }
 0x19f   : > { %v760_v19 = vperm.slane %v754_v23, %v3041_v45  ;;  %v901_v28 = vsel %vm717_vm2, 0.0, %v900_v15  ;;  %v741_v29 = vrot.slane %v736_v22, 4  ;;  %v744_v30 = vsel %vm717_vm2, %v736_v22, %v743_v14 }
 0x1a0   : > { %v752_v32 = vperm.slane %v744_v30, %v3041_v45  ;;  %v771_v34 = vrot.slane %v764_v26, 4  ;;  %v968_v35 = vrot.slane %v2734_v27, 4  ;;  %v971_v37 = vsel %vm717_vm2, %v2734_v27, %v970_v18 }
 0x1a1   : > { %v769_v33 = vrot.slane %v760_v19, 4  ;;  %v742_v36 = vsel %vm717_vm2, %v741_v29, %v724_v52  ;;  %v983_v38 = vsel %vm717_vm2, %v2735_v5, %v982_v16  ;;  %v987_v39 = vperm.slane %v981_v31, %v3030_v25 }
 0x1a2   : > { %v748_v40 = vperm.slane %v742_v36, %v3041_v45  ;;  %v767_v41 = vrot.slane %v752_v32, 4  ;;  %v772_v43 = vsel %vm717_vm2, 0.0, %v771_v34  ;;  %v784_v44 = vsel %vm717_vm2, %v771_v34, %v760_v19 }
 0x1a3   : > { %v770_v42 = vsel %vm717_vm2, 0.0, %v769_v33  ;;  %v789_v46 = vrot.slane %v772_v43, 4  ;;  %v969_v47 = vsel %vm717_vm2, %v968_v35, %v2729_v55  ;;  %v979_v48 = vperm.slane %v971_v37, %v3030_v25 }
 0x1a4   : > { %v898_v49 = vrot.slane %v889_v20, 4  ;;  %v765_v50 = vrot.slane %v748_v40, 4  ;;  %v768_v51 = vsel %vm717_vm2, 0.0, %v767_v41  ;;  %v773_v52 = vsel %vm717_vm2, %v767_v41, %v748_v40 }
 0x1a5   : > { %v902_v53 = vsel %vm717_vm2, %v896_v9, %v877_v61  ;;  %v907_v54 = vrot.slane %v897_v24, 4  ;;  %v790_v56 = vsel %vm717_vm2, %v789_v46, %v770_v42  ;;  %v975_v57 = vperm.slane %v969_v47, %v3030_v25 }
 0x1a6   : > { %v918_v58 = vrot.slane %v901_v28, 4  ;;  %v3088_v59 = vperm.slane %v773_v52, %v3030_v25  ;;  %v3091_v55 = vperm.slane %v784_v44, %v3030_v25  ;;  %v991_v60 = vperm.slane %v983_v38, %v3030_v25 }
 0x1a7   : > { %v778_v62 = vrot.slane %v768_v51, 4  ;;  %v992_v63 = vrot.slane %v987_v39, 4  ;;  %v994_v0 = vrot.slane %v975_v57, 4  ;;  %v1006_v1 = vrot.slane %v979_v48, 4 }
 0x1a8   : > { %v766_v61 = vsel %vm717_vm2, 0.0, %v765_v50  ;;  %v3096_v2 = vperm.slane %v790_v56, %v3030_v25  ;;  %v1004_v3 = vrot.slane %v991_v60, 4  ;;  %v899_v4 = vsel %vm717_vm2, 0.0, %v898_v49 }
 0x1a9   : > { %v993_v5 = vsel %vm717_vm2, %v992_v63, %v975_v57  ;;  %v995_v6 = vsel %vm717_vm2, %v987_v39, %v994_v0  ;;  %v1007_v7 = vsel %vm717_vm2, %v991_v60, %v1006_v1  ;;  %v906_v8 = vperm.slane %v902_v53, %v3030_v25 }
 0x1aa   : > { %v999_v9 = vperm.slane %v993_v5, %v3041_v45  ;;  %v1003_v10 = vperm.slane %v995_v6, %v3041_v45  ;;  %v1005_v11 = vsel %vm717_vm2, %v1004_v3, %v979_v48  ;;  %v1015_v12 = vperm.slane %v1007_v7, %v3041_v45 }
 0x1ab   : > { %v1011_v13 = vperm.slane %v1005_v11, %v3041_v45  ;;  %v908_v14 = vsel %vm717_vm2, %v907_v54, %v895_v21  ;;  %v913_v16 = vsel %vm717_vm2, %v900_v15, %v889_v20  ;;  %v919_v18 = vsel %vm717_vm2, %v918_v58, %v899_v4 }
 0x1ac   : > { %v809_v22 = vrot.slane %v3091_v55, 4  ;;  %v1018_v23 = vrot.slane %v1003_v10, 4  ;;  %v1022_v24 = vrot.slane %v1015_v12, 4  ;;  %v912_v19 = vperm.slane %v908_v14, %v3030_v25 }
 0x1ad   : > { %v1020_v26 = vrot.slane %v1011_v13, 4  ;;  %v917_v27 = vperm.slane %v913_v16, %v3030_v25  ;;  %v923_v28 = vperm.slane %v919_v18, %v3030_v25  ;;  %v926_v29 = vrot.slane %v906_v8, 4 }
 0x1ae   : > { %v779_v30 = vsel %vm717_vm2, %v778_v62, %v766_v61  ;;  %v1019_v21 = vsel %vm717_vm2, 0.0, %v1018_v23  ;;  %v1023_v15 = vsel %vm717_vm2, 0.0, %v1022_v24  ;;  %v924_v20 = vrot.slane %v912_v19, 4 }
 0x1af   : > { %v1016_v31 = vrot.slane %v999_v9, 4  ;;  %v1021_v32 = vsel %vm717_vm2, 0.0, %v1020_v26  ;;  %v1035_v33 = vsel %vm717_vm2, %v1022_v24, %v1011_v13  ;;  %v927_v34 = vsel %vm717_vm2, %v912_v19, %v926_v29 }
 0x1b0   : > { %v935_v35 = vperm.slane %v927_v34, %v3041_v45  ;;  %v938_v36 = vrot.slane %v917_v27, 4  ;;  %v925_v37 = vsel %vm717_vm2, %v924_v20, %v906_v8  ;;  %v936_v38 = vrot.slane %v923_v28, 4 }
 0x1b1   : > { %v1029_v39 = vrot.slane %v1019_v21, 4  ;;  %v1040_v40 = vrot.slane %v1023_v15, 4  ;;  %v931_v41 = vperm.slane %v925_v37, %v3041_v45  ;;  %v783_v42 = vperm.slane %v779_v30, %v3030_v25 }
 0x1b2   : > { %v939_v43 = vsel %vm717_vm2, %v923_v28, %v938_v36  ;;  %v954_v44 = vrot.slane %v935_v35, 4  ;;  %v937_v46 = vsel %vm717_vm2, %v936_v38, %v917_v27  ;;  %v797_v47 = vrot.slane %v3088_v59, 4 }
 0x1b3   : > { %v947_v48 = vperm.slane %v939_v43, %v3041_v45  ;;  %v943_v49 = vperm.slane %v937_v46, %v3041_v45  ;;  %v950_v50 = vrot.slane %v931_v41, 4  ;;  %v810_v51 = vsel %vm717_vm2, %v3096_v2, %v809_v22 }
 0x1b4   : > { %v798_v52 = vsel %vm717_vm2, %v783_v42, %v797_v47  ;;  %v818_v53 = vperm.slane %v810_v51, %v3041_v45  ;;  %v1017_v54 = vsel %vm717_vm2, 0.0, %v1016_v31  ;;  %v1024_v56 = vsel %vm717_vm2, %v1018_v23, %v999_v9 }
 0x1b5   : > { %v955_v57 = vsel %vm717_vm2, %v947_v48, %v954_v44  ;;  %v951_v58 = vsel %vm717_vm2, %v943_v49, %v950_v50  ;;  %v952_v60 = vrot.slane %v947_v48, 4  ;;  %v948_v62 = vrot.slane %v943_v49, 4 }
 0x1b6   : > { %v1085_v63 = vpack.c.bf16 %v955_v57, %v955_v57  ;;  %v1083_v0 = vpack.c.bf16 %v951_v58, %v951_v58  ;;  %v806_v1 = vperm.slane %v798_v52, %v3041_v45  ;;  %v1028_v61 = vperm.slane %v1024_v56, %v3030_v25 }
 0x1b7   : > { %v953_v3 = vsel %vm717_vm2, %v952_v60, %v935_v35  ;;  %v949_v4 = vsel %vm717_vm2, %v948_v62, %v931_v41  ;;  %v1030_v5 = vsel %vm717_vm2, %v1029_v39, %v1017_v54  ;;  %v1039_v6 = vperm.slane %v1035_v33, %v3030_v25 }
 0x1b8   : > { %v1148_v7 = vsel %vm1086_vm3, %v1085_v63, 0  ;;  %v1110_v8 = vsel %vm1086_vm3, %v1083_v0, 0  ;;  %v1084_v9 = vpack.c.bf16 %v953_v3, %v953_v3  ;;  %v1082_v10 = vpack.c.bf16 %v949_v4, %v949_v4 }
 0x1b9   : > { %1157 = vmatpush.bf16.xpose.msrb.mxu0 %v1148_v7  ;;  %1119 = vmatpush.bf16.xpose.msra.mxu2 %v1110_v8  ;;  %v825_v11 = vrot.slane %v806_v1, 4  ;;  %v1034_v12 = vperm.slane %v1030_v5, %v3030_v25  ;;  %v1041_v13 = vsel %vm717_vm2, %v1040_v40, %v1021_v32  ;;  %v1048_v14 = vrot.slane %v1028_v61, 4 }
 0x1ba   : > { %v1129_v16 = vsel %vm1086_vm3, %v1084_v9, 0  ;;  %v1091_v18 = vsel %vm1086_vm3, %v1082_v10, 0  ;;  %v1045_v22 = vperm.slane %v1041_v13, %v3030_v25  ;;  %v1060_v23 = vrot.slane %v1039_v6, 4 }
 0x1bb   : > { %1138 = vmatpush.bf16.xpose.msra.mxu3 %v1129_v16  ;;  %1100 = vmatpush.bf16.xpose.msra.mxu1 %v1091_v18  ;;  %v826_v24 = vsel %vm717_vm2, %v818_v53, %v825_v11  ;;  %v1049_v19 = vsel %vm717_vm2, %v1034_v12, %v1048_v14  ;;  %v795_v26 = vrot.slane %v783_v42, 4  ;;  %v807_v30 = vrot.slane %v3096_v2, 4  ;;  %v1547_v14 = vpop.permute.xlu1 %1546 }
 0x1bc   : > { %v1081_v27 = vpack.c.bf16 %v826_v24, %v826_v24  ;;  %v1057_v28 = vperm.slane %v1049_v19, %v3041_v45  ;;  %v1061_v29 = vsel %vm717_vm2, %v1045_v22, %v1060_v23  ;;  %v823_v20 = vrot.slane %v818_v53, 4 }
 0x1bd   : > { %v1069_v21 = vperm.slane %v1061_v29, %v3041_v45  ;;  %v796_v15 = vsel %vm717_vm2, %v795_v26, %v3088_v59  ;;  %v1046_v31 = vrot.slane %v1034_v12, 4  ;;  %v808_v34 = vsel %vm717_vm2, %v807_v30, %v3091_v55 }
 0x1be   : > { %v1076_v32 = vrot.slane %v1057_v28, 4  ;;  %v802_v33 = vperm.slane %v796_v15, %v3041_v45  ;;  %v1058_v35 = vrot.slane %v1045_v22, 4  ;;  %v814_v37 = vperm.slane %v808_v34, %v3041_v45 }
 0x1bf   : > { %v1074_v36 = vrot.slane %v1069_v21, 4  ;;  %v824_v38 = vsel %vm717_vm2, %v823_v20, %v806_v1  ;;  %v1047_v2 = vsel %vm717_vm2, %v1046_v31, %v1028_v61  ;;  %v701_v1 = vlaneseq }
 0x1c0   : > { %2614 = vmatmul.msk.bf16.vlgmr.msrb.gmra.mxu0 %vm1086_vm3, %v1081_v27  ;;  %v821_v39 = vrot.slane %v802_v33, 4  ;;  %v1080_v59 = vpack.c.bf16 %v824_v38, %v824_v38  ;;  %v1053_v40 = vperm.slane %v1047_v2, %v3041_v45  ;;  %v1059_v41 = vsel %vm717_vm2, %v1058_v35, %v1039_v6 }
 0x1c1   : > { %v1075_v42 = vsel %vm717_vm2, %v1074_v36, %v1057_v28  ;;  %v1065_v55 = vperm.slane %v1059_v41, %v3041_v45  ;;  %v1077_v43 = vsel %vm717_vm2, %v1069_v21, %v1076_v32  ;;  %v819_v44 = vrot.slane %v814_v37, 4 }
 0x1c2   : > { %v1219_v46 = vpack.c.bf16 %v1075_v42, %v1075_v42  ;;  %v822_v47 = vsel %vm717_vm2, %v814_v37, %v821_v39  ;;  %2613 = vmatmul.msk.bf16.vlgmr.msra.gmra.mxu3 %vm1086_vm3, %v1080_v59  ;;  %v1220_v48 = vpack.c.bf16 %v1077_v43, %v1077_v43  ;;  %v1072_v49 = vrot.slane %v1053_v40, 4 }
 0x1c3   : > { %v1079_v50 = vpack.c.bf16 %v822_v47, %v822_v47  ;;  %v1070_v51 = vrot.slane %v1065_v55, 4  ;;  %v820_v52 = vsel %vm717_vm2, %v819_v44, %v802_v33  ;;  %v702_v61 = vshrl.u32 %v701_v1, 7  ;;  %v1549_v27 = vpop.permute.xlu1 %1548 }
 0x1c4   : > { %v1264_v53 = vsel %vm1224_vm4, %v1219_v46, 0  ;;  %v1283_v54 = vsel %vm1224_vm4, %v1220_v48, 0  ;;  %v1078_v56 = vpack.c.bf16 %v820_v52, %v820_v52  ;;  %v1073_v57 = vsel %vm717_vm2, %v1065_v55, %v1072_v49 }
 0x1c5   : > { %1273 = vmatpush.bf16.msrb.mxu3 %v1264_v53  ;;  %2612 = vmatmul.msk.bf16.vlgmr.msra.gmra.mxu2 %vm1086_vm3, %v1079_v50  ;;  %v1071_v58 = vsel %vm717_vm2, %v1070_v51, %v1053_v40  ;;  %v1218_v60 = vpack.c.bf16 %v1073_v57, %v1073_v57  ;;  %v704_v3 = vand.u32 127, %v701_v1  ;;  %v3202_v29 = vpack.i.bf16 %v1547_v14, %v3020_v17 }
 0x1c6   : > { %v1217_v62 = vpack.c.bf16 %v1071_v58, %v1071_v58  ;;  %1292 = vmatpush.bf16.msra.mxu0 %v1283_v54  ;;  %2611 = vmatmul.msk.bf16.vlgmr.msra.gmra.mxu1 %vm1086_vm3, %v1078_v56  ;;  %v3211_v21 = vmul.f32 0.35355338, %v3020_v17 }
 0x1c7   : > { %v1245_v63 = vsel %vm1224_vm4, %v1218_v60, 0  ;;  %vm3182_vm5 = vcmp.le.s32.totalorder %v704_v3, %v702_v61 }
 0x1c8   : > { %v1226_v0 = vsel %vm1224_vm4, %v1217_v62, 0  ;;  %1254 = vmatpush.bf16.msrb.mxu2 %v1245_v63 }
 0x1c9   : > { %1235 = vmatpush.bf16.msrb.mxu1 %v1226_v0 }
 0x1cb   : > { %v1551_v28 = vpop.permute.xlu1 %1550 }
 0x1cc   : > { %v3204_v30 = vpack.i.bf16 %v1551_v28, %v1549_v27 }
 0x23d   : > { %v1159_v5 = vpop.f32.mrf.mxu0 }
 0x23e   : > { %v3188_v6 = vsel %vm3182_vm5, %v1159_v5, -1e+30 }
 0x23f   : > { %v1178_v7 = vsel %vm1086_vm3, %v3188_v6, -inf }
 0x240   : > { %1179 = vmax.xlane.f32.xlu2 %v1178_v7 }
 0x243   : > { %v1102_v8 = vpop.f32.mrf.mxu1 }
 0x244   : > { %v1165_v9 = vsel %vm3182_vm5, %v1102_v8, -1e+30 }
 0x245   : > { %v1169_v10 = vsel %vm1086_vm3, %v1165_v9, -inf  ;;  %v1140_v11 = vpop.f32.mrf.mxu3  ;;  %v1161_v12 = vpop.f32.mrf.mxu0 }
 0x246   : > { %1170 = vmax.xlane.f32.xlu1 %v1169_v10  ;;  %v1167_v13 = vsel %vm3182_vm5, %v1140_v11, -1e+30 }
 0x247   : > { %v1175_v16 = vsel %vm1086_vm3, %v1167_v13, -inf }
 0x248   : > { %v1121_v18 = vpop.f32.mrf.mxu2  ;;  %1176 = vmax.xlane.f32.xlu2 %v1175_v16 }
 0x249   : > { %v1166_v22 = vsel %vm3182_vm5, %v1121_v18, -1e+30 }
 0x24a   : > { %v1172_v23 = vsel %vm1086_vm3, %v1166_v22, -inf }
 0x24b   : > { %1173 = vmax.xlane.f32.xlu0 %v1172_v23  ;;  %v1104_v24 = vpop.f32.mrf.mxu1 }
 0x24d   : > { %v1142_v19 = vpop.f32.mrf.mxu3 }
 0x250   : > { %v1123_v26 = vpop.f32.mrf.mxu2 }
 0x25f   : > { %2737 = vrot.lane.b32.xlu0 %v3202_v29, %s2850_s19 }
 0x260   : > { %2742 = vrot.lane.b32.xlu2 %v3204_v30, %s2850_s19 }
 0x268   : > { %1426 = vrot.lane.b32.xlu2 %v3211_v21, %s2848_s26 }
 0x270   : > { %1432 = vrot.lane.b32.xlu2 %v3211_v21, %s2847_s15 }
 0x2b3   : > { %v3217_v15 = vpop.xlane.xlu2 %1179 }
 0x2b9   : > { %v1171_v20 = vpop.xlane.xlu1 %1170 }
 0x2ba   : > { %v1181_v31 = vsub.f32 %v1165_v9, %v1171_v20 }
 0x2bb   : > { %v1177_v32 = vpop.xlane.xlu2 %1176 }
 0x2bc   : > { %v1185_v33 = vmul.f32 1.442695, %v1181_v31  ;;  %v1183_v34 = vsub.f32 %v1167_v13, %v1177_v32 }
 0x2be   : > { %2779 = vpow2.f32 %v1185_v33  ;;  %v1189_v35 = vmul.f32 1.442695, %v1183_v34  ;;  %v1174_v36 = vpop.xlane.xlu0 %1173 }
 0x2bf   : > { %v1182_v37 = vsub.f32 %v1166_v22, %v1174_v36 }
 0x2c0   : > { %2781 = vpow2.f32 %v1189_v35 }
 0x2c1   : > { %v1187_v17 = vmul.f32 1.442695, %v1182_v37 }
 0x2c3   : > { %2783 = vpow2.f32 %v1187_v17  ;;  %v2743_v42 = vpop.permute.xlu2 %2742 }
 0x2c4   : > { %v3219_v38 = vpop.eup %2779  ;;  %v2745_v55 = vunpack.i.h.bf16 %v2743_v42  ;;  %v2744_v43 = vunpack.i.l.bf16 %v2743_v42 }
 0x2c5   : > { %v1193_v2 = vsel %vm1086_vm3, %v3219_v38, 0.0 }
 0x2c6   : > { %v3223_v39 = vpop.eup %2781  ;;  %1194 = vadd.xlane.f32.xlu2 %v1193_v2  ;;  %v1576_v46 = vrot.slane %v2745_v55, 4  ;;  %v1564_v47 = vrot.slane %v2744_v43, 4 }
 0x2c7   : > { %v1199_v59 = vsel %vm1086_vm3, %v3223_v39, 0.0 }
 0x2c8   : > { %1200 = vadd.xlane.f32.xlu1 %v1199_v59 }
 0x2c9   : > { %v3227_v40 = vpop.eup %2783 }
 0x2ca   : > { %v1196_v41 = vsel %vm1086_vm3, %v3227_v40, 0.0 }
 0x2cb   : > { %1197 = vadd.xlane.f32.xlu0 %v1196_v41 }
 0x2d1   : > { %v2738_v44 = vpop.permute.xlu0 %2737 }
 0x2d2   : > { %v2740_v48 = vunpack.i.h.bf16 %v2738_v44  ;;  %v2739_v49 = vunpack.i.l.bf16 %v2738_v44 }
 0x2d4   : > { %v1577_v50 = vsel %vm717_vm2, %v1576_v46, %v2740_v48  ;;  %v1578_v51 = vrot.slane %v2740_v48, 4  ;;  %v1565_v52 = vsel %vm717_vm2, %v1564_v47, %v2739_v49  ;;  %v1566_v53 = vrot.slane %v2739_v49, 4 }
 0x2d5   : > { %v1583_v54 = vperm.slane %v1577_v50, %v3030_v25  ;;  %v1571_v56 = vperm.slane %v1565_v52, %v3030_v25 }
 0x2d6   : > { %v1579_v57 = vsel %vm717_vm2, %v2745_v55, %v1578_v51  ;;  %v1567_v58 = vsel %vm717_vm2, %v2744_v43, %v1566_v53 }
 0x2d7   : > { %v1587_v60 = vperm.slane %v1579_v57, %v3030_v25  ;;  %v1588_v62 = vrot.slane %v1583_v54, 4  ;;  %v1575_v63 = vperm.slane %v1567_v58, %v3030_v25  ;;  %v1590_v0 = vrot.slane %v1571_v56, 4 }
 0x2d9   : > { %v1600_v1 = vrot.slane %v1587_v60, 4  ;;  %v1589_v61 = vsel %vm717_vm2, %v1588_v62, %v1571_v56  ;;  %v1591_v3 = vsel %vm717_vm2, %v1583_v54, %v1590_v0  ;;  %v1602_v5 = vrot.slane %v1575_v63, 4 }
 0x2da   : > { %v1595_v7 = vperm.slane %v1589_v61, %v3041_v45  ;;  %v1599_v8 = vperm.slane %v1591_v3, %v3041_v45 }
 0x2db   : > { %v1601_v9 = vsel %vm717_vm2, %v1600_v1, %v1575_v63  ;;  %v1603_v10 = vsel %vm717_vm2, %v1587_v60, %v1602_v5  ;;  %v1184_v5 = vsub.f32 %v3188_v6, %v3217_v15 }
 0x2dc   : > { %v1607_v11 = vperm.slane %v1601_v9, %v3041_v45  ;;  %v1611_v12 = vperm.slane %v1603_v10, %v3041_v45  ;;  %v1612_v13 = vrot.slane %v1595_v7, 4  ;;  %v1614_v14 = vrot.slane %v1599_v8, 4  ;;  %v1427_v10 = vpop.permute.xlu2 %1426 }
 0x2de   : > { %v1615_v16 = vsel %vm717_vm2, 0.0, %v1614_v14  ;;  %v1616_v18 = vrot.slane %v1607_v11, 4  ;;  %v1618_v22 = vrot.slane %v1611_v12, 4  ;;  %v1620_v23 = vsel %vm717_vm2, %v1614_v14, %v1595_v7 }
 0x2df   : > { %v1625_v24 = vrot.slane %v1615_v16, 4  ;;  %v1613_v19 = vsel %vm717_vm2, 0.0, %v1612_v13  ;;  %v1624_v27 = vperm.slane %v1620_v23, %v3030_v25  ;;  %v1191_v7 = vmul.f32 1.442695, %v1184_v5 }
 0x2e0   : > { %v1619_v26 = vsel %vm717_vm2, 0.0, %v1618_v22  ;;  %v1631_v28 = vsel %vm717_vm2, %v1618_v22, %v1607_v11  ;;  %v1617_v33 = vsel %vm717_vm2, 0.0, %v1616_v18 }
 0x2e1   : > { %v1636_v20 = vrot.slane %v1619_v26, 4  ;;  %1429 = vrot.lane.b32.xlu1 %v3211_v21, %s2849_s27  ;;  %v1626_v31 = vsel %vm717_vm2, %v1625_v24, %v1613_v19  ;;  %v1635_v32 = vperm.slane %v1631_v28, %v3030_v25  ;;  %v1644_v35 = vrot.slane %v1624_v27, 4  ;;  %s3644_s27 = scalar_lea.vmem %s3616_s6, %s2950_s29 }
 0x2e2   : > { %v1630_v34 = vperm.slane %v1626_v31, %v3030_v25  ;;  %2785 = vpow2.f32 %v1191_v7  ;;  %v1437_v31 = vrot.slane %v3211_v21, 4 }
 0x2e3   : > { %v1637_v36 = vsel %vm717_vm2, %v1636_v20, %v1617_v33  ;;  %v1656_v37 = vrot.slane %v1635_v32, 4 }
 0x2e4   : > { %v1641_v17 = vperm.slane %v1637_v36, %v3030_v25  ;;  %v1645_v2 = vsel %vm717_vm2, %v1630_v34, %v1644_v35  ;;  %v1642_v59 = vrot.slane %v1630_v34, 4  ;;  %v1433_v11 = vpop.permute.xlu2 %1432 }
 0x2e5   : > { %v1653_v41 = vperm.slane %v1645_v2, %v3041_v45  ;;  %v1447_v28 = vrot.slane %v1433_v11, 4 }
 0x2e6   : > { %v1657_v42 = vsel %vm717_vm2, %v1641_v17, %v1656_v37  ;;  %v1643_v55 = vsel %vm717_vm2, %v1642_v59, %v1624_v27  ;;  %v1654_v43 = vrot.slane %v1641_v17, 4  ;;  %v1449_v27 = vrot.slane %v1427_v10, 4 }
 0x2e7   : > { %v1665_v44 = vperm.slane %v1657_v42, %v3041_v45  ;;  %v1672_v46 = vrot.slane %v1653_v41, 4  ;;  %v1649_v47 = vperm.slane %v1643_v55, %v3041_v45 }
 0x2e8   : > { %v1655_v48 = vsel %vm717_vm2, %v1654_v43, %v1635_v32  ;;  %v3279_v8 = vpop.eup %2785  ;;  %v1450_v20 = vsel %vm717_vm2, %v1433_v11, %v1449_v27 }
 0x2e9   : > { %v1673_v49 = vsel %vm717_vm2, %v1665_v44, %v1672_v46  ;;  %v1661_v50 = vperm.slane %v1655_v48, %v3041_v45  ;;  %v1668_v51 = vrot.slane %v1649_v47, 4  ;;  %v1670_v52 = vrot.slane %v1665_v44, 4 }
 0x2ea   : > { %v1803_v53 = vpack.c.bf16 %v1673_v49, %v1673_v49  ;;  %v1202_v9 = vsel %vm1086_vm3, %v3279_v8, 0.0 }
 0x2eb   : > { %v1669_v54 = vsel %vm717_vm2, %v1661_v50, %v1668_v51  ;;  %v1671_v56 = vsel %vm717_vm2, %v1670_v52, %v1653_v41  ;;  %v1666_v57 = vrot.slane %v1661_v50, 4 }
 0x2ec   : > { %v1865_v58 = vsel %vm1086_vm3, %v1803_v53, 0  ;;  %v1801_v60 = vpack.c.bf16 %v1669_v54, %v1669_v54  ;;  %v1802_v62 = vpack.c.bf16 %v1671_v56, %v1671_v56 }
 0x2ed   : > { %1874 = vmatpush.bf16.xpose.msrb.mxu0 %v1865_v58  ;;  %v1667_v63 = vsel %vm717_vm2, %v1666_v57, %v1649_v47 }
 0x2ee   : > { %v1827_v0 = vsel %vm1086_vm3, %v1801_v60, 0  ;;  %v1846_v1 = vsel %vm1086_vm3, %v1802_v62, 0  ;;  %v1800_v61 = vpack.c.bf16 %v1667_v63, %v1667_v63 }
 0x2ef   : > { %1836 = vmatpush.bf16.xpose.msra.mxu2 %v1827_v0  ;;  %1855 = vmatpush.bf16.xpose.msra.mxu3 %v1846_v1 }
 0x2f0   : > { %v1808_v3 = vsel %vm1086_vm3, %v1800_v61, 0 }
 0x2f1   : > { %1817 = vmatpush.bf16.xpose.msra.mxu1 %v1808_v3 }
 0x30b   : > { %1203 = vadd.xlane.f32.xlu1 %v1202_v9 }
 0x339   : > { %v1195_v12 = vpop.xlane.xlu2 %1194 }
 0x33a   : > { %2787 = vrcp.f32 %v1195_v12 }
 0x33b   : > { %v1201_v13 = vpop.xlane.xlu1 %1200 }
 0x33c   : > { %2789 = vrcp.f32 %v1201_v13 }
 0x33e   : > { %v1198_v14 = vpop.xlane.xlu0 %1197 }
 0x33f   : > { %2791 = vrcp.f32 %v1198_v14 }
 0x340   : > { %v2788_v16 = vpop.eup %2787 }
 0x341   : > { %v1209_v18 = vmul.f32 %v2788_v16, %v3219_v38  ;;  %v1448_v38 = vsel %vm717_vm2, %v1447_v28, %v1427_v10 }
 0x342   : > { %v2790_v6 = vpop.eup %2789  ;;  %v1454_v32 = vperm.slane %v1448_v38, %v3030_v25 }
 0x343   : > { %v1211_v15 = vmul.f32 %v2790_v6, %v3223_v39  ;;  %v1213_v22 = vpack.c.bf16 %v1209_v18, %v1209_v18  ;;  %v1458_v39 = vperm.slane %v1450_v20, %v3030_v25 }
 0x344   : > { %v1459_v17 = vrot.slane %v1454_v32, 4 }
 0x345   : > { %v2792_v23 = vpop.eup %2791  ;;  %2615 = vmatmul.msk.bf16.vlgmr.msrb.gmra.mxu1 %vm1086_vm3, %v1213_v22  ;;  %v1215_v24 = vpack.c.bf16 %v1211_v15, %v1211_v15  ;;  %v1471_v35 = vrot.slane %v1458_v39, 4 }
 0x346   : > { %v1210_v19 = vmul.f32 %v2792_v23, %v3227_v40 }
 0x347   : > { %2617 = vmatmul.msk.bf16.vlgmr.msrb.gmra.mxu3 %vm1086_vm3, %v1215_v24 }
 0x348   : > { %v1214_v26 = vpack.c.bf16 %v1210_v19, %v1210_v19 }
 0x34a   : > { %2616 = vmatmul.msk.bf16.vlgmr.msrb.gmra.mxu2 %vm1086_vm3, %v1214_v26 }
 0x353   : > { %v1430_v33 = vpop.permute.xlu1 %1429 }
 0x354   : > { %v1435_v34 = vrot.slane %v1430_v33, 4  ;;  %v1438_v40 = vsel %vm717_vm2, %v1430_v33, %v1437_v31 }
 0x355   : > { %v1446_v36 = vperm.slane %v1438_v40, %v3030_v25 }
 0x356   : > { %v1436_v37 = vsel %vm717_vm2, %v1435_v34, %v3211_v21 }
 0x357   : > { %v1442_v2 = vperm.slane %v1436_v37, %v3030_v25  ;;  %v1472_v59 = vsel %vm717_vm2, %v1471_v35, %v1446_v36  ;;  %v1473_v41 = vrot.slane %v1446_v36, 4 }
 0x358   : > { %v1478_v42 = vperm.slane %v1472_v59, %v3041_v45 }
 0x359   : > { %v1460_v55 = vsel %vm717_vm2, %v1459_v17, %v1442_v2  ;;  %v1461_v43 = vrot.slane %v1442_v2, 4  ;;  %v1474_v44 = vsel %vm717_vm2, %v1458_v39, %v1473_v41 }
 0x35a   : > { %v1466_v46 = vperm.slane %v1460_v55, %v3041_v45  ;;  %v1482_v47 = vperm.slane %v1474_v44, %v3041_v45  ;;  %v1487_v49 = vrot.slane %v1478_v42, 4 }
 0x35b   : > { %v1462_v48 = vsel %vm717_vm2, %v1454_v32, %v1461_v43 }
 0x35c   : > { %v1470_v21 = vperm.slane %v1462_v48, %v3041_v45  ;;  %v1489_v50 = vrot.slane %v1482_v47, 4  ;;  %v1483_v51 = vrot.slane %v1466_v46, 4  ;;  %v1488_v60 = vsel %vm717_vm2, 0.0, %v1487_v49 }
 0x35e   : > { %v1485_v52 = vrot.slane %v1470_v21, 4  ;;  %v1490_v53 = vsel %vm717_vm2, 0.0, %v1489_v50  ;;  %v1502_v54 = vsel %vm717_vm2, %v1489_v50, %v1478_v42  ;;  %v1484_v3 = vsel %vm717_vm2, 0.0, %v1483_v51 }
 0x35f   : > { %v1506_v56 = vperm.slane %v1502_v54, %v3030_v25  ;;  %v1507_v57 = vrot.slane %v1490_v53, 4 }
 0x360   : > { %v1486_v58 = vsel %vm717_vm2, 0.0, %v1485_v52  ;;  %v1491_v62 = vsel %vm717_vm2, %v1485_v52, %v1466_v46 }
 0x361   : > { %v1495_v63 = vperm.slane %v1491_v62, %v3030_v25  ;;  %v1496_v0 = vrot.slane %v1486_v58, 4  ;;  %v1508_v1 = vsel %vm717_vm2, %v1507_v57, %v1488_v60  ;;  %v1527_v61 = vrot.slane %v1506_v56, 4 }
 0x362   : > { %v1512_v5 = vperm.slane %v1508_v1, %v3030_v25 }
 0x363   : > { %v1497_v7 = vsel %vm717_vm2, %v1496_v0, %v1484_v3  ;;  %v1515_v9 = vrot.slane %v1495_v63, 4 }
 0x364   : > { %v1501_v10 = vperm.slane %v1497_v7, %v3030_v25  ;;  %v1525_v11 = vrot.slane %v1512_v5, 4  ;;  %v1528_v12 = vsel %vm717_vm2, %v1512_v5, %v1527_v61 }
 0x365   : > { %v1536_v13 = vperm.slane %v1528_v12, %v3041_v45 }
 0x366   : > { %v1513_v14 = vrot.slane %v1501_v10, 4  ;;  %v1526_v16 = vsel %vm717_vm2, %v1525_v11, %v1506_v56  ;;  %v1516_v18 = vsel %vm717_vm2, %v1501_v10, %v1515_v9 }
 0x367   : > { %v1524_v6 = vperm.slane %v1516_v18, %v3041_v45  ;;  %v1541_v15 = vrot.slane %v1536_v13, 4  ;;  %v1532_v22 = vperm.slane %v1526_v16, %v3041_v45 }
 0x368   : > { %v1514_v23 = vsel %vm717_vm2, %v1513_v14, %v1495_v63 }
 0x369   : > { %v1542_v24 = vsel %vm717_vm2, %v1541_v15, %v1524_v6  ;;  %v1520_v19 = vperm.slane %v1514_v23, %v3041_v45  ;;  %v1537_v26 = vrot.slane %v1532_v22, 4  ;;  %v1543_v35 = vrot.slane %v1524_v6, 4 }
 0x36a   : > { %v1798_v27 = vpack.c.bf16 %v1542_v24, %v1542_v24 }
 0x36b   : > { %v1538_v28 = vsel %vm717_vm2, %v1537_v26, %v1520_v19  ;;  %v1539_v20 = vrot.slane %v1520_v19, 4  ;;  %v1544_v36 = vsel %vm717_vm2, %v1536_v13, %v1543_v35 }
 0x36c   : > { %2621 = vmatmul.msk.bf16.vlgmr.msra.gmra.mxu3 %vm1086_vm3, %v1798_v27  ;;  %v1796_v38 = vpack.c.bf16 %v1538_v28, %v1538_v28  ;;  %v1799_v37 = vpack.c.bf16 %v1544_v36, %v1544_v36 }
 0x36d   : > { %v1540_v39 = vsel %vm717_vm2, %v1532_v22, %v1539_v20 }
 0x36e   : > { %2619 = vmatmul.msk.bf16.vlgmr.msra.gmra.mxu1 %vm1086_vm3, %v1796_v38  ;;  %v1797_v31 = vpack.c.bf16 %v1540_v39, %v1540_v39 }
 0x370   : > { %2620 = vmatmul.msk.bf16.vlgmr.msra.gmra.mxu2 %vm1086_vm3, %v1797_v31 }
 0x37e   : > { %v1204_v32 = vpop.xlane.xlu1 %1203 }
 0x37f   : > { %2793 = vrcp.f32 %v1204_v32 }
 0x385   : > { %v2794_v33 = vpop.eup %2793 }
 0x386   : > { %v1212_v34 = vmul.f32 %v2794_v33, %v3279_v8 }
 0x388   : > { %v1216_v40 = vpack.c.bf16 %v1212_v34, %v1212_v34 }
 0x38a   : > { %2618 = vmatmul.msk.bf16.vlgmr.msra.gmra.mxu0 %vm1086_vm3, %v1216_v40 }
 0x39a   : > { %2622 = vmatmul.msk.bf16.vlgmr.msrb.gmra.mxu0 %vm1086_vm3, %v1799_v37 }
 0x3c2   : > { %v1237_v17 = vpop.f32.mrf.mxu1 }
 0x3c3   : > { %v1300_v2 = vrot.slane %v1237_v17, 4 }
 0x3ca   : > { %v1239_v59 = vpop.f32.mrf.mxu1  ;;  %v1275_v41 = vpop.f32.mrf.mxu3 }
 0x3cb   : > { %v1298_v42 = vrot.slane %v1275_v41, 4  ;;  %v1301_v55 = vsel %vm717_vm2, %v1275_v41, %v1300_v2 }
 0x3cc   : > { %v1309_v60 = vperm.slane %v1301_v55, %v3030_v25 }
 0x3cd   : > { %v1256_v43 = vpop.f32.mrf.mxu2  ;;  %v1299_v44 = vsel %vm717_vm2, %v1298_v42, %v1237_v17 }
 0x3ce   : > { %v1312_v62 = vrot.slane %v1256_v43, 4  ;;  %v1305_v63 = vperm.slane %v1299_v44, %v3030_v25  ;;  %v1336_v3 = vrot.slane %v1309_v60, 4 }
 0x3d0   : > { %v1324_v9 = vrot.slane %v1305_v63, 4 }
 0x3d2   : > { %v1277_v8 = vpop.f32.mrf.mxu3 }
 0x3d5   : > { %v1258_v46 = vpop.f32.mrf.mxu2 }
 0x3eb   : > { %v1819_v47 = vpop.f32.mrf.mxu1 }
 0x3ec   : > { %v3341_v48 = vsel %vm3182_vm5, %v1819_v47, -1e+30 }
 0x3ed   : > { %v1884_v21 = vsel %vm1086_vm3, %v3341_v48, -inf }
 0x3ee   : > { %1885 = vmax.xlane.f32.xlu0 %v1884_v21 }
 0x3ef   : > { %v1857_v49 = vpop.f32.mrf.mxu3 }
 0x3f0   : > { %v3347_v50 = vsel %vm3182_vm5, %v1857_v49, -1e+30 }
 0x3f1   : > { %v1890_v53 = vsel %vm1086_vm3, %v3347_v50, -inf }
 0x3f3   : > { %v1821_v51 = vpop.f32.mrf.mxu1  ;;  %v1838_v52 = vpop.f32.mrf.mxu2 }
 0x3f4   : > { %v3353_v56 = vsel %vm3182_vm5, %v1838_v52, -1e+30 }
 0x3f5   : > { %v1887_v58 = vsel %vm1086_vm3, %v3353_v56, -inf }
 0x3f6   : > { %1891 = vmax.xlane.f32.xlu0 %v1890_v53 }
 0x3f7   : > { %v1859_v54 = vpop.f32.mrf.mxu3 }
 0x3fb   : > { %v1840_v57 = vpop.f32.mrf.mxu2 }
 0x3fe   : > { %1888 = vmax.xlane.f32.xlu0 %v1887_v58 }
 0x407   : > { %v1294_v0 = vpop.f32.mrf.mxu0 }
 0x408   : > { %v1310_v1 = vrot.slane %v1294_v0, 4  ;;  %v1313_v61 = vsel %vm717_vm2, %v1294_v0, %v1312_v62 }
 0x409   : > { %v1321_v5 = vperm.slane %v1313_v61, %v3030_v25 }
 0x40a   : > { %v1311_v7 = vsel %vm717_vm2, %v1310_v1, %v1256_v43 }
 0x40b   : > { %v1317_v10 = vperm.slane %v1311_v7, %v3030_v25  ;;  %v1334_v11 = vrot.slane %v1321_v5, 4  ;;  %v1337_v12 = vsel %vm717_vm2, %v1321_v5, %v1336_v3 }
 0x40c   : > { %v1345_v13 = vperm.slane %v1337_v12, %v3041_v45 }
 0x40d   : > { %v1322_v14 = vrot.slane %v1317_v10, 4  ;;  %v1325_v16 = vsel %vm717_vm2, %v1317_v10, %v1324_v9  ;;  %v1335_v18 = vsel %vm717_vm2, %v1334_v11, %v1309_v60 }
 0x40e   : > { %v1333_v6 = vperm.slane %v1325_v16, %v3041_v45  ;;  %v1341_v15 = vperm.slane %v1335_v18, %v3041_v45  ;;  %v1352_v22 = vrot.slane %v1345_v13, 4 }
 0x40f   : > { %v1323_v23 = vsel %vm717_vm2, %v1322_v14, %v1305_v63  ;;  %v1296_v24 = vpop.f32.mrf.mxu0 }
 0x410   : > { %v1329_v19 = vperm.slane %v1323_v23, %v3041_v45  ;;  %v1348_v26 = vrot.slane %v1333_v6, 4  ;;  %v1350_v27 = vrot.slane %v1341_v15, 4  ;;  %v1353_v28 = vsel %vm717_vm2, 0.0, %v1352_v22 }
 0x411   : > { %v1365_v20 = vsel %vm717_vm2, %v1352_v22, %v1341_v15  ;;  %v1370_v38 = vrot.slane %v1353_v28, 4 }
 0x412   : > { %v1346_v39 = vrot.slane %v1329_v19, 4  ;;  %v1349_v31 = vsel %vm717_vm2, 0.0, %v1348_v26  ;;  %v1351_v32 = vsel %vm717_vm2, 0.0, %v1350_v27  ;;  %v1354_v33 = vsel %vm717_vm2, %v1348_v26, %v1329_v19  ;;  %2747 = vrot.lane.b32.xlu0 %v3202_v29, %s2851_s16 }
 0x413   : > { %v1359_v34 = vrot.slane %v1349_v31, 4  ;;  %v1369_v40 = vperm.slane %v1365_v20, %v3030_v25  ;;  %v1371_v35 = vsel %vm717_vm2, %v1370_v38, %v1351_v32  ;;  %v1358_v36 = vperm.slane %v1354_v33, %v3030_v25 }
 0x414   : > { %v1375_v37 = vperm.slane %v1371_v35, %v3030_v25  ;;  %v1347_v17 = vsel %vm717_vm2, 0.0, %v1346_v39 }
 0x415   : > { %v1390_v2 = vrot.slane %v1369_v40, 4  ;;  %v1360_v59 = vsel %vm717_vm2, %v1359_v34, %v1347_v17  ;;  %v1378_v41 = vrot.slane %v1358_v36, 4 }
 0x416   : > { %v1364_v42 = vperm.slane %v1360_v59, %v3030_v25  ;;  %v1388_v55 = vrot.slane %v1375_v37, 4 }
 0x417   : > { %v1876_v43 = vpop.f32.mrf.mxu0  ;;  %v1391_v29 = vsel %vm717_vm2, %v1375_v37, %v1390_v2 }
 0x418   : > { %v1883_v44 = vsel %vm3182_vm5, %v1876_v43, -1e+30  ;;  %v1379_v8 = vsel %vm717_vm2, %v1364_v42, %v1378_v41  ;;  %v1399_v46 = vperm.slane %v1391_v29, %v3041_v45  ;;  %v1376_v47 = vrot.slane %v1364_v42, 4 }
 0x419   : > { %v1893_v21 = vsel %vm1086_vm3, %v1883_v44, -inf  ;;  %v1387_v49 = vperm.slane %v1379_v8, %v3041_v45  ;;  %v1389_v51 = vsel %vm717_vm2, %v1388_v55, %v1369_v40 }
 0x41a   : > { %1894 = vmax.xlane.f32.xlu2 %v1893_v21  ;;  %v1404_v52 = vrot.slane %v1399_v46, 4  ;;  %v1377_v53 = vsel %vm717_vm2, %v1376_v47, %v1358_v36  ;;  %v1395_v54 = vperm.slane %v1389_v51, %v3041_v45 }
 0x41b   : > { %v1383_v4 = vperm.slane %v1377_v53, %v3041_v45  ;;  %v1406_v57 = vrot.slane %v1387_v49, 4 }
 0x41c   : > { %v3397_v58 = vsel %vm717_vm2, %v1404_v52, %v1387_v49  ;;  %v1400_v60 = vrot.slane %v1395_v54, 4 }
 0x41d   : > { %v1402_v62 = vrot.slane %v1383_v4, 4  ;;  %v3400_v63 = vsel %vm717_vm2, %v1399_v46, %v1406_v57 }
 0x41e   : > { %v3403_v0 = vsel %vm717_vm2, %v1400_v60, %v1383_v4 }
 0x41f   : > { %v1878_v1 = vpop.f32.mrf.mxu0  ;;  %v3406_v61 = vsel %vm717_vm2, %v1395_v54, %v1402_v62 }
 0x432   : > { %2752 = vrot.lane.b32.xlu2 %v3204_v30, %s2851_s16 }
 0x461   : > { %v1886_v3 = vpop.xlane.xlu0 %1885 }
 0x462   : > { %v1896_v5 = vsub.f32 %v3341_v48, %v1886_v3 }
 0x464   : > { %v1900_v7 = vmul.f32 1.442695, %v1896_v5 }
 0x466   : > { %2795 = vpow2.f32 %v1900_v7 }
 0x469   : > { %v1892_v9 = vpop.xlane.xlu0 %1891 }
 0x46a   : > { %v1898_v10 = vsub.f32 %v3347_v50, %v1892_v9 }
 0x46c   : > { %v3412_v11 = vpop.eup %2795  ;;  %v1904_v12 = vmul.f32 1.442695, %v1898_v10 }
 0x46d   : > { %v1908_v13 = vsel %vm1086_vm3, %v3412_v11, 0.0 }
 0x46e   : > { %2797 = vpow2.f32 %v1904_v12  ;;  %1909 = vadd.xlane.f32.xlu0 %v1908_v13 }
 0x471   : > { %v1889_v14 = vpop.xlane.xlu0 %1888 }
 0x472   : > { %v1897_v16 = vsub.f32 %v3353_v56, %v1889_v14 }
 0x474   : > { %v3417_v30 = vpop.eup %2797  ;;  %v1902_v18 = vmul.f32 1.442695, %v1897_v16 }
 0x475   : > { %v1914_v48 = vsel %vm1086_vm3, %v3417_v30, 0.0 }
 0x476   : > { %2799 = vpow2.f32 %v1902_v18  ;;  %1915 = vadd.xlane.f32.xlu1 %v1914_v48 }
 0x47c   : > { %v3421_v50 = vpop.eup %2799 }
 0x47d   : > { %v1911_v6 = vsel %vm1086_vm3, %v3421_v50, 0.0 }
 0x47e   : > { %1912 = vadd.xlane.f32.xlu1 %v1911_v6 }
 0x484   : > { %v2748_v23 = vpop.permute.xlu0 %2747 }
 0x485   : > { %v2750_v19 = vunpack.i.h.bf16 %v2748_v23  ;;  %v2749_v56 = vunpack.i.l.bf16 %v2748_v23 }
 0x487   : > { %v1700_v27 = vrot.slane %v2750_v19, 4  ;;  %v1688_v28 = vrot.slane %v2749_v56, 4 }
 0x48d   : > { %v1895_v15 = vpop.xlane.xlu2 %1894 }
 0x48e   : > { %v1899_v22 = vsub.f32 %v1883_v44, %v1895_v15 }
 0x490   : > { %v1906_v24 = vmul.f32 1.442695, %v1899_v22 }
 0x492   : > { %2801 = vpow2.f32 %v1906_v24 }
 0x495   : > { %v2753_v26 = vpop.permute.xlu2 %2752 }
 0x496   : > { %v2755_v20 = vunpack.i.h.bf16 %v2753_v26  ;;  %v2754_v38 = vunpack.i.l.bf16 %v2753_v26 }
 0x498   : > { %v3425_v39 = vpop.eup %2801  ;;  %v1698_v31 = vrot.slane %v2755_v20, 4  ;;  %v1686_v32 = vrot.slane %v2754_v38, 4  ;;  %v1689_v33 = vsel %vm717_vm2, %v2754_v38, %v1688_v28  ;;  %v1701_v34 = vsel %vm717_vm2, %v2755_v20, %v1700_v27 }
 0x499   : > { %v1697_v40 = vperm.slane %v1689_v33, %v3030_v25  ;;  %v1709_v35 = vperm.slane %v1701_v34, %v3030_v25  ;;  %v1917_v36 = vsel %vm1086_vm3, %v3425_v39, 0.0 }
 0x49a   : > { %v1687_v37 = vsel %vm717_vm2, %v1686_v32, %v2749_v56  ;;  %v1699_v17 = vsel %vm717_vm2, %v1698_v31, %v2750_v19  ;;  %1918 = vadd.xlane.f32.xlu1 %v1917_v36 }
 0x49b   : > { %v1693_v2 = vperm.slane %v1687_v37, %v3030_v25  ;;  %v1705_v59 = vperm.slane %v1699_v17, %v3030_v25  ;;  %v1722_v41 = vrot.slane %v1709_v35, 4  ;;  %v1724_v42 = vrot.slane %v1697_v40, 4 }
 0x49d   : > { %v1710_v55 = vrot.slane %v1705_v59, 4  ;;  %v1712_v43 = vrot.slane %v1693_v2, 4  ;;  %v1723_v29 = vsel %vm717_vm2, %v1722_v41, %v1697_v40  ;;  %v1725_v44 = vsel %vm717_vm2, %v1709_v35, %v1724_v42 }
 0x49e   : > { %v1729_v8 = vperm.slane %v1723_v29, %v3041_v45  ;;  %v1733_v46 = vperm.slane %v1725_v44, %v3041_v45 }
 0x49f   : > { %v1711_v47 = vsel %vm717_vm2, %v1710_v55, %v1693_v2  ;;  %v1713_v21 = vsel %vm717_vm2, %v1705_v59, %v1712_v43 }
 0x4a0   : > { %v1717_v49 = vperm.slane %v1711_v47, %v3041_v45  ;;  %v1721_v51 = vperm.slane %v1713_v21, %v3041_v45  ;;  %v1738_v52 = vrot.slane %v1729_v8, 4  ;;  %v1740_v53 = vrot.slane %v1733_v46, 4 }
 0x4a2   : > { %v1734_v54 = vrot.slane %v1717_v49, 4  ;;  %v1736_v4 = vrot.slane %v1721_v51, 4  ;;  %v1741_v57 = vsel %vm717_vm2, 0.0, %v1740_v53  ;;  %v1753_v60 = vsel %vm717_vm2, %v1740_v53, %v1729_v8 }
 0x4a3   : > { %v1758_v62 = vrot.slane %v1741_v57, 4  ;;  %v1739_v3 = vsel %vm717_vm2, 0.0, %v1738_v52  ;;  %v1757_v5 = vperm.slane %v1753_v60, %v3030_v25 }
 0x4a4   : > { %v1737_v1 = vsel %vm717_vm2, 0.0, %v1736_v4  ;;  %v1742_v7 = vsel %vm717_vm2, %v1736_v4, %v1717_v49  ;;  %v1735_v13 = vsel %vm717_vm2, 0.0, %v1734_v54 }
 0x4a5   : > { %v1747_v9 = vrot.slane %v1737_v1, 4  ;;  %v1746_v10 = vperm.slane %v1742_v7, %v3030_v25  ;;  %v1759_v12 = vsel %vm717_vm2, %v1758_v62, %v1739_v3  ;;  %v1778_v16 = vrot.slane %v1757_v5, 4 }
 0x4a6   : > { %v1763_v14 = vperm.slane %v1759_v12, %v3030_v25 }
 0x4a7   : > { %v1748_v18 = vsel %vm717_vm2, %v1747_v9, %v1735_v13  ;;  %v1766_v48 = vrot.slane %v1746_v10, 4 }
 0x4a8   : > { %v1752_v6 = vperm.slane %v1748_v18, %v3030_v25  ;;  %v1779_v15 = vsel %vm717_vm2, %v1763_v14, %v1778_v16  ;;  %v1776_v22 = vrot.slane %v1763_v14, 4 }
 0x4a9   : > { %v1787_v23 = vperm.slane %v1779_v15, %v3041_v45 }
 0x4aa   : > { %v1767_v24 = vsel %vm717_vm2, %v1752_v6, %v1766_v48  ;;  %v1764_v19 = vrot.slane %v1752_v6, 4  ;;  %v1777_v56 = vsel %vm717_vm2, %v1776_v22, %v1757_v5 }
 0x4ab   : > { %v1775_v26 = vperm.slane %v1767_v24, %v3041_v45  ;;  %v1792_v27 = vrot.slane %v1787_v23, 4  ;;  %v1783_v28 = vperm.slane %v1777_v56, %v3041_v45 }
 0x4ac   : > { %v1765_v20 = vsel %vm717_vm2, %v1764_v19, %v1746_v10 }
 0x4ad   : > { %v1793_v38 = vsel %vm717_vm2, %v1792_v27, %v1775_v26  ;;  %v1771_v31 = vperm.slane %v1765_v20, %v3041_v45  ;;  %v1788_v32 = vrot.slane %v1783_v28, 4  ;;  %v1794_v33 = vrot.slane %v1775_v26, 4 }
 0x4ae   : > { %v1934_v34 = vpack.c.bf16 %v1793_v38, %v1793_v38 }
 0x4af   : > { %v1789_v40 = vsel %vm717_vm2, %v1788_v32, %v1771_v31  ;;  %v1795_v35 = vsel %vm717_vm2, %v1787_v23, %v1794_v33  ;;  %v1790_v36 = vrot.slane %v1771_v31, 4 }
 0x4b0   : > { %v1978_v37 = vsel %vm1224_vm4, %v1934_v34, 0  ;;  %v1932_v17 = vpack.c.bf16 %v1789_v40, %v1789_v40  ;;  %v1935_v2 = vpack.c.bf16 %v1795_v35, %v1795_v35 }
 0x4b1   : > { %1987 = vmatpush.bf16.msrb.mxu3 %v1978_v37  ;;  %v1791_v59 = vsel %vm717_vm2, %v1783_v28, %v1790_v36 }
 0x4b2   : > { %v1940_v41 = vsel %vm1224_vm4, %v1932_v17, 0  ;;  %v1997_v42 = vsel %vm1224_vm4, %v1935_v2, 0  ;;  %v1933_v55 = vpack.c.bf16 %v1791_v59, %v1791_v59 }
 0x4b3   : > { %1949 = vmatpush.bf16.msrb.mxu1 %v1940_v41  ;;  %2006 = vmatpush.bf16.msra.mxu0 %v1997_v42 }
 0x4b4   : > { %v1959_v43 = vsel %vm1224_vm4, %v1933_v55, 0 }
 0x4b5   : > { %1968 = vmatpush.bf16.msrb.mxu2 %v1959_v43 }
 0x4e1   : > { %v1910_v29 = vpop.xlane.xlu0 %1909 }
 0x4e2   : > { %2803 = vrcp.f32 %v1910_v29 }
 0x4e8   : > { %v2804_v44 = vpop.eup %2803 }
 0x4e9   : > { %v1924_v8 = vmul.f32 %v2804_v44, %v3412_v11  ;;  %v1916_v46 = vpop.xlane.xlu1 %1915 }
 0x4ea   : > { %2805 = vrcp.f32 %v1916_v46 }
 0x4eb   : > { %v1928_v47 = vpack.c.bf16 %v1924_v8, %v1924_v8 }
 0x4ed   : > { %2623 = vmatmul.msk.bf16.vlgmr.msrb.gmra.mxu1 %vm1086_vm3, %v1928_v47 }
 0x4f0   : > { %v2806_v21 = vpop.eup %2805 }
 0x4f1   : > { %v1926_v49 = vmul.f32 %v2806_v21, %v3417_v30  ;;  %v1913_v51 = vpop.xlane.xlu1 %1912 }
 0x4f2   : > { %2807 = vrcp.f32 %v1913_v51 }
 0x4f3   : > { %v1930_v52 = vpack.c.bf16 %v1926_v49, %v1926_v49 }
 0x4f5   : > { %2625 = vmatmul.msk.bf16.vlgmr.msrb.gmra.mxu3 %vm1086_vm3, %v1930_v52 }
 0x4f8   : > { %v2808_v53 = vpop.eup %2807 }
 0x4f9   : > { %v1925_v54 = vmul.f32 %v2808_v53, %v3421_v50 }
 0x4fb   : > { %v1929_v4 = vpack.c.bf16 %v1925_v54, %v1925_v54 }
 0x4fd   : > { %2624 = vmatmul.msk.bf16.vlgmr.msrb.gmra.mxu2 %vm1086_vm3, %v1929_v4 }
 0x50d   : > { %v1919_v11 = vpop.xlane.xlu1 %1918 }
 0x50e   : > { %2809 = vrcp.f32 %v1919_v11 }
 0x514   : > { %v2810_v57 = vpop.eup %2809 }
 0x515   : > { %v1927_v60 = vmul.f32 %v2810_v57, %v3425_v39 }
 0x517   : > { %v1931_v62 = vpack.c.bf16 %v1927_v60, %v1927_v60 }
 0x519   : > { %2626 = vmatmul.msk.bf16.vlgmr.msra.gmra.mxu0 %vm1086_vm3, %v1931_v62 }
 0x56a   : > { %v1951_v30 = vpop.f32.mrf.mxu1 }
 0x56b   : > { %v2014_v10 = vrot.slane %v1951_v30, 4 }
 0x572   : > { %v1953_v1 = vpop.f32.mrf.mxu1 }
 0x578   : > { %v1989_v3 = vpop.f32.mrf.mxu3 }
 0x579   : > { %v2012_v12 = vrot.slane %v1989_v3, 4  ;;  %v2015_v50 = vsel %vm717_vm2, %v1989_v3, %v2014_v10 }
 0x57a   : > { %v2023_v14 = vperm.slane %v2015_v50, %v3030_v25 }
 0x57b   : > { %v2013_v13 = vsel %vm717_vm2, %v2012_v12, %v1951_v30 }
 0x57c   : > { %v2019_v39 = vperm.slane %v2013_v13, %v3030_v25  ;;  %v2050_v15 = vrot.slane %v2023_v14, 4 }
 0x57e   : > { %v2038_v24 = vrot.slane %v2019_v39, 4 }
 0x580   : > { %v1970_v5 = vpop.f32.mrf.mxu2  ;;  %v1991_v7 = vpop.f32.mrf.mxu3 }
 0x581   : > { %v2026_v16 = vrot.slane %v1970_v5, 4 }
 0x588   : > { %v1972_v9 = vpop.f32.mrf.mxu2 }
 0x596   : > { %v2008_v18 = vpop.f32.mrf.mxu0 }
 0x597   : > { %v2024_v48 = vrot.slane %v2008_v18, 4  ;;  %v2027_v6 = vsel %vm717_vm2, %v2008_v18, %v2026_v16  ;;  %v2673_v18 = vld [vmem:[%s2963_s22] sm:$0xff] }
 0x598   : > { %v2035_v22 = vperm.slane %v2027_v6, %v3030_v25 }
 0x599   : > { %v2025_v23 = vsel %vm717_vm2, %v2024_v48, %v1970_v5 }
 0x59a   : > { %v2031_v19 = vperm.slane %v2025_v23, %v3030_v25  ;;  %v2048_v56 = vrot.slane %v2035_v22, 4  ;;  %v2051_v26 = vsel %vm717_vm2, %v2035_v22, %v2050_v15 }
 0x59b   : > { %v2059_v27 = vperm.slane %v2051_v26, %v3041_v45 }
 0x59c   : > { %v2036_v28 = vrot.slane %v2031_v19, 4  ;;  %v2039_v20 = vsel %vm717_vm2, %v2031_v19, %v2038_v24  ;;  %v2049_v38 = vsel %vm717_vm2, %v2048_v56, %v2023_v14 }
 0x59d   : > { %v2047_v31 = vperm.slane %v2039_v20, %v3041_v45  ;;  %v2055_v32 = vperm.slane %v2049_v38, %v3041_v45  ;;  %v2066_v33 = vrot.slane %v2059_v27, 4 }
 0x59e   : > { %v2037_v34 = vsel %vm717_vm2, %v2036_v28, %v2019_v39  ;;  %v2010_v40 = vpop.f32.mrf.mxu0 }
 0x59f   : > { %v2043_v35 = vperm.slane %v2037_v34, %v3041_v45  ;;  %v2062_v36 = vrot.slane %v2047_v31, 4  ;;  %v2064_v37 = vrot.slane %v2055_v32, 4  ;;  %v2067_v17 = vsel %vm717_vm2, 0.0, %v2066_v33  ;;  %v2821_v40 = vld [vmem:[#allocation2] sm:$0xff] }
 0x5a0   : > { %v2079_v2 = vsel %vm717_vm2, %v2066_v33, %v2055_v32  ;;  %v2084_v59 = vrot.slane %v2067_v17, 4  ;;  %v2772_v32 = vld [vmem:[%s3642_s21] ss:$0 sm:$0xff]  ;;  %v2822_v17 = vld [vmem:[#allocation2 + $0x8] sm:$0xff] }
 0x5a1   : > { %v2060_v41 = vrot.slane %v2043_v35, 4  ;;  %v2063_v42 = vsel %vm717_vm2, 0.0, %v2062_v36  ;;  %v2065_v55 = vsel %vm717_vm2, 0.0, %v2064_v37  ;;  %v2068_v43 = vsel %vm717_vm2, %v2062_v36, %v2043_v35 }
 0x5a2   : > { %v2073_v29 = vrot.slane %v2063_v42, 4  ;;  %v2083_v44 = vperm.slane %v2079_v2, %v3030_v25  ;;  %v2085_v8 = vsel %vm717_vm2, %v2084_v59, %v2065_v55  ;;  %v2072_v46 = vperm.slane %v2068_v43, %v3030_v25 }
 0x5a3   : > { %v2089_v47 = vperm.slane %v2085_v8, %v3030_v25  ;;  %v2061_v21 = vsel %vm717_vm2, 0.0, %v2060_v41  ;;  %v2857_v41 = vmov 32.0  }
 0x5a4   : > { %v2104_v49 = vrot.slane %v2083_v44, 4  ;;  %v2074_v51 = vsel %vm717_vm2, %v2073_v29, %v2061_v21  ;;  %v2092_v52 = vrot.slane %v2072_v46, 4  ;;  %2811 = vrcp.f32 %v2857_v41 }
 0x5a5   : > { %v2078_v53 = vperm.slane %v2074_v51, %v3030_v25  ;;  %v2102_v54 = vrot.slane %v2089_v47, 4 }
 0x5a6   : > { %v2105_v4 = vsel %vm717_vm2, %v2089_v47, %v2104_v49 }
 0x5a7   : > { %v2093_v11 = vsel %vm717_vm2, %v2078_v53, %v2092_v52  ;;  %v2113_v57 = vperm.slane %v2105_v4, %v3041_v45  ;;  %v2090_v60 = vrot.slane %v2078_v53, 4  ;;  %v2103_v62 = vsel %vm717_vm2, %v2102_v54, %v2083_v44 }
 0x5a8   : > { %v2101_v30 = vperm.slane %v2093_v11, %v3041_v45  ;;  %v2109_v1 = vperm.slane %v2103_v62, %v3041_v45 }
 0x5a9   : > { %v2118_v3 = vrot.slane %v2113_v57, 4  ;;  %v2091_v5 = vsel %vm717_vm2, %v2090_v60, %v2072_v46 }
 0x5aa   : > { %v2097_v7 = vperm.slane %v2091_v5, %v3041_v45  ;;  %v2114_v25 = vrot.slane %v2109_v1, 4  ;;  %v2120_v16 = vrot.slane %v2101_v30, 4  ;;  %v2812_v42 = vpop.eup %2811 }
 0x5ab   : > { %v2119_v9 = vsel %vm717_vm2, %v2118_v3, %v2101_v30  ;;  %v2184_v55 = vmul.f32 32.0, %v2812_v42  ;;  %vm2188_vm8 = vweird.f32 %v2812_v42  ;;  %v2676_v30 = vld [vmem:[%s2980_s18 + $0x8] sm:$0xff] }
 0x5ac   : > { %v2761_v10 = vpack.i.bf16 %v2119_v9, %v3397_v58  ;;  %v2116_v12 = vrot.slane %v2097_v7, 4  ;;  %v2115_v50 = vsel %vm717_vm2, %v2114_v25, %v2097_v7  ;;  %v2121_v45 = vsel %vm717_vm2, %v2113_v57, %v2120_v16  ;;  %v2674_v58 = vld [vmem:[%s2963_s22 + $0x8] sm:$0xff]  ;;  %2270 = vmatpush.bf16.msra.mxu2 %v2676_v30 }
 0x5ad   : > { %v2766_v39 = vpack.i.bf16 %v2121_v45, %v3400_v63  ;;  %2167 = vmatpush.bf16.msra.mxu1 %v2674_v58  ;;  %v2185_v43 = vsub.f32 1.0, %v2184_v55 }
 0x5ae   : > { %2762 = vrot.lane.b32.xlu1 %v2761_v10, %s2854_s14  ;;  %v2117_v13 = vsel %vm717_vm2, %v2109_v1, %v2116_v12  ;;  %v2675_v1 = vld [vmem:[%s2980_s18] sm:$0xff] }
 0x5af   : > { %v2756_v14 = vpack.i.bf16 %v2117_v13, %v3406_v61  ;;  %v2186_v29 = vmul.f32 %v2812_v42, %v2185_v43 }
 0x5b0   : > { %2271 = vmatpush.bf16.msra.mxu2 %v2675_v1 }
 0x5b1   : > { %2757 = vrot.lane.b32.xlu2 %v2756_v14, %s2855_s30  ;;  %2168 = vmatpush.bf16.msra.mxu1 %v2673_v18  ;;  %v2187_v44 = vadd.f32 %v2812_v42, %v2186_v29 }
 0x5b3   : > { %v3537_v8 = vsel %vm2188_vm8, %v2812_v42, %v2187_v44 }
 0x5b9   : > { %2767 = vrot.lane.b32.xlu2 %v2766_v39, %s2856_s17 }
 0x60b   : > { %v2758_v48 = vpop.permute.xlu2 %2757 }
 0x60c   : > { %v2760_v6 = vunpack.i.h.bf16 %v2758_v48  ;;  %v2759_v15 = vunpack.i.l.bf16 %v2758_v48  ;;  %v2773_v48 = vld [vmem:[%s3643_s24] ss:$0 sm:$0xff] }
 0x60e   : > { %v1420_v19 = vsel %vm1086_vm3, %v3403_v0, %v2759_v15  ;;  %v2134_v63 = vsel %vm1086_vm3, %v2115_v50, %v2760_v6 }
 0x613   : > { %v2768_v22 = vpop.permute.xlu2 %2767 }
 0x614   : > { %v2770_v56 = vunpack.i.h.bf16 %v2768_v22  ;;  %v2769_v26 = vunpack.i.l.bf16 %v2768_v22 }
 0x620   : > { %v2763_v61 = vpop.permute.xlu1 %2762 }
 0x621   : > { %v2765_v23 = vunpack.i.h.bf16 %v2763_v61  ;;  %v2764_v24 = vunpack.i.l.bf16 %v2763_v61  ;;  %v2774_v61 = vld [vmem:[%s3644_s27] ss:$0 sm:$0xff] }
 0x623   : > { %v1422_v27 = vsel %vm1421_vm6, %v1420_v19, %v2764_v24  ;;  %v2135_v28 = vsel %vm1421_vm6, %v2134_v63, %v2765_v23 }
 0x624   : > { %v1424_v20 = vsel %vm1423_vm7, %v1422_v27, %v2769_v26  ;;  %v2136_v38 = vsel %vm1423_vm7, %v2135_v28, %v2770_v56  ;;  %v2680_v27 = vld [vmem:[%s2990_s28 + $0x18] sm:$0xff]  ;;  %v2679_v28 = vld [vmem:[%s2990_s28 + $0x10] sm:$0xff] }
 0x625   : > { %v2137_v31 = vpack.c.bf16 %v2136_v38, %v1424_v20  ;;  %2325 = vmatpush.bf16.msra.mxu3 %v2680_v27  ;;  %v2678_v20 = vld [vmem:[%s2990_s28 + $0x8] sm:$0xff]  ;;  %v2677_v38 = vld [vmem:[%s2990_s28] sm:$0xff] }
 0x627   : > { %2635 = vmatmul.msk.bf16.vlgmr.msra.gmra.mxu1 %vm681_vm1, %v2137_v31 }
 0x629   : > { %2326 = vmatpush.bf16.msra.mxu3 %v2679_v28 }
 0x62d   : > { %2327 = vmatpush.bf16.msra.mxu3 %v2678_v20 }
 0x631   : > { %2328 = vmatpush.bf16.msra.mxu3 %v2677_v38 }
 0x6a4   : > { %v2170_v33 = vpop.f32.mrf.mxu1 }
 0x6a5   : > { %v2171_v34 = vadd.f32 %v2772_v32, %v2170_v33 }
 0x6a7   : > { %v2175_v0 = vadd.f32 %v2821_v40, %v2171_v34 }
 0x6a9   : > { %v2177_v35 = vsel %vm681_vm1, %v2175_v0, 0.0 }
 0x6aa   : > { %2178 = vadd.xlane.f32.xlu2 %v2177_v35 }
 0x6ac   : > { %v2172_v36 = vpop.f32.mrf.mxu1 }
 0x6ad   : > { %v2173_v37 = vadd.f32 %v2772_v32, %v2172_v36  ;;  %v2775_v32 = vld [vmem:[%s627_s1] ss:$0 sm:$0xff] }
 0x6af   : > { %v2176_v2 = vadd.f32 %v2822_v17, %v2173_v37  ;;  %v2776_v37 = vld [vmem:[%s635_s0] ss:$0 sm:$0xff] }
 0x6b1   : > { %v2180_v59 = vsel %vm681_vm1, %v2176_v2, 0.0 }
 0x6b2   : > { %2181 = vadd.xlane.f32.xlu1 %v2180_v59 }
 0x71d   : > { %v2179_v46 = vpop.xlane.xlu2 %2178 }
 0x71e   : > { %v2190_v47 = vmul.f32 %v3537_v8, %v2179_v46 }
 0x720   : > { %v2192_v21 = vsub.f32 %v2175_v0, %v2190_v47 }
 0x722   : > { %v2194_v49 = vmul.f32 %v2192_v21, %v2192_v21 }
 0x724   : > { %v2196_v51 = vsel %vm681_vm1, %v2194_v49, 0.0 }
 0x725   : > { %v2182_v52 = vpop.xlane.xlu1 %2181  ;;  %2197 = vadd.xlane.f32.xlu0 %v2196_v51 }
 0x726   : > { %v2191_v53 = vmul.f32 %v3537_v8, %v2182_v52 }
 0x728   : > { %v2193_v54 = vsub.f32 %v2176_v2, %v2191_v53 }
 0x72a   : > { %v2195_v4 = vmul.f32 %v2193_v54, %v2193_v54 }
 0x72c   : > { %v2199_v11 = vsel %vm681_vm1, %v2195_v4, 0.0 }
 0x72d   : > { %2200 = vadd.xlane.f32.xlu0 %v2199_v11 }
 0x798   : > { %v2198_v57 = vpop.xlane.xlu0 %2197 }
 0x799   : > { %v2202_v60 = vmul.f32 %v2198_v57, %v3537_v8 }
 0x79b   : > { %v2204_v62 = vadd.f32 1e-05, %v2202_v60 }
 0x79d   : > { %2813 = vrsqrt.f32 %v2204_v62  ;;  %vm2212_vm10 = vweird.f32 %v2204_v62 }
 0x7a0   : > { %v2201_v3 = vpop.xlane.xlu0 %2200 }
 0x7a1   : > { %v2203_v5 = vmul.f32 %v2201_v3, %v3537_v8 }
 0x7a3   : > { %v2814_v7 = vpop.eup %2813  ;;  %v2205_v25 = vadd.f32 1e-05, %v2203_v5 }
 0x7a4   : > { %v2207_v9 = vmul.f32 %v2814_v7, %v2204_v62  ;;  %vm2213_vm9 = vweird.f32 %v2814_v7 }
 0x7a5   : > { %2815 = vrsqrt.f32 %v2205_v25  ;;  %vm2214_vm11 = vmor %vm2212_vm10, %vm2213_vm9  ;;  %vm2222_vm13 = vweird.f32 %v2205_v25 }
 0x7a6   : > { %v2208_v10 = vmul.f32 %v2814_v7, %v2207_v9 }
 0x7a8   : > { %v2209_v12 = vmul.f32 0.5, %v2208_v10 }
 0x7aa   : > { %v2210_v50 = vsub.f32 1.5, %v2209_v12 }
 0x7ab   : > { %v2816_v13 = vpop.eup %2815 }
 0x7ac   : > { %v2211_v14 = vmul.f32 %v2814_v7, %v2210_v50  ;;  %v2217_v16 = vmul.f32 %v2816_v13, %v2205_v25  ;;  %vm2223_vm12 = vweird.f32 %v2816_v13 }
 0x7ad   : > { %vm2224_vm14 = vmor %vm2222_vm13, %vm2223_vm12 }
 0x7ae   : > { %v2218_v45 = vmul.f32 %v2816_v13, %v2217_v16  ;;  %v2215_v39 = vsel %vm2214_vm11, %v2814_v7, %v2211_v14  ;;  %v2778_v16 = vld [vmem:[%s641_s13] ss:$0 sm:$0xff] }
 0x7af   : > { %v2226_v6 = vmul.f32 %v2215_v39, %v2192_v21 }
 0x7b0   : > { %v2219_v58 = vmul.f32 0.5, %v2218_v45 }
 0x7b1   : > { %v2232_v23 = vmul.f32 %v2773_v48, %v2226_v6 }
 0x7b2   : > { %v2220_v18 = vsub.f32 1.5, %v2219_v58 }
 0x7b3   : > { %v2238_v63 = vadd.f32 %v2774_v61, %v2232_v23 }
 0x7b4   : > { %v2221_v15 = vmul.f32 %v2816_v13, %v2220_v18 }
 0x7b6   : > { %v2225_v22 = vsel %vm2224_vm14, %v2816_v13, %v2221_v15  ;;  %v2777_v13 = vld [vmem:[%s638_s2] ss:$0 sm:$0xff]  ;;  %s3645_s2 = sld [smem:[#allocation10_spill]] (!%p2662_p6) }
 0x7b7   : > { %v2227_v24 = vmul.f32 %v2225_v22, %v2193_v54 }
 0x7b9   : > { %v2233_v19 = vmul.f32 %v2773_v48, %v2227_v24 }
 0x7bb   : > { %v2239_v56 = vadd.f32 %v2774_v61, %v2233_v19 }
 0x7bd   : > { %v2240_v26 = vpack.c.bf16 %v2239_v56, %v2238_v63 }
 0x7bf   : > { %2644 = vmatmul.msk.bf16.vlgmr.msra.gmra.mxu2 %vm681_vm1, %v2240_v26 }
 0x842   : > { %v2273_v31 = vpop.f32.mrf.mxu2 }
 0x843   : > { %v2274_v33 = vadd.f32 %v2775_v32, %v2273_v31 }
 0x845   : > { %v2278_v0 = vmax.f32 %v2274_v33, 0.0 }
 0x84a   : > { %v2275_v34 = vpop.f32.mrf.mxu2 }
 0x84b   : > { %v2276_v40 = vadd.f32 %v2775_v32, %v2275_v34 }
 0x84d   : > { %v2279_v35 = vmax.f32 %v2276_v40, 0.0 }
 0x84f   : > { %v2280_v36 = vpack.c.bf16 %v2279_v35, %v2278_v0 }
 0x851   : > { %2661 = vmatmul.msk.bf16.vlgmr.msra.gmra.mxu3 %vm2317_vm15, %v2280_v36 }
 0x8d4   : > { %v2330_v17 = vpop.f32.mrf.mxu3 }
 0x8d5   : > { %v2331_v2 = vadd.f32 %v2776_v37, %v2330_v17 }
 0x8d7   : > { %v2335_v59 = vadd.f32 %v2331_v2, %v2238_v63 }
 0x8d9   : > { %v2337_v41 = vsel %vm681_vm1, %v2335_v59, 0.0 }
 0x8da   : > { %2338 = vadd.xlane.f32.xlu0 %v2337_v41 }
 0x8dc   : > { %v2332_v42 = vpop.f32.mrf.mxu3 }
 0x8dd   : > { %v2333_v55 = vadd.f32 %v2776_v37, %v2332_v42 }
 0x8df   : > { %v2336_v43 = vadd.f32 %v2333_v55, %v2239_v56 }
 0x8e1   : > { %v2340_v29 = vsel %vm681_vm1, %v2336_v43, 0.0 }
 0x8e2   : > { %2341 = vadd.xlane.f32.xlu2 %v2340_v29 }
 0x94d   : > { %v2339_v44 = vpop.xlane.xlu0 %2338 }
 0x94e   : > { %v2343_v46 = vmul.f32 %v2339_v44, %v3537_v8 }
 0x950   : > { %v2345_v47 = vsub.f32 %v2335_v59, %v2343_v46 }
 0x952   : > { %v2347_v21 = vmul.f32 %v2345_v47, %v2345_v47 }
 0x954   : > { %v2349_v49 = vsel %vm681_vm1, %v2347_v21, 0.0 }
 0x955   : > { %v2342_v51 = vpop.xlane.xlu2 %2341  ;;  %2350 = vadd.xlane.f32.xlu0 %v2349_v49 }
 0x956   : > { %v2344_v52 = vmul.f32 %v2342_v51, %v3537_v8 }
 0x958   : > { %v2346_v53 = vsub.f32 %v2336_v43, %v2344_v52 }
 0x95a   : > { %v2348_v54 = vmul.f32 %v2346_v53, %v2346_v53 }
 0x95c   : > { %v2352_v4 = vsel %vm681_vm1, %v2348_v54, 0.0 }
 0x95d   : > { %2353 = vadd.xlane.f32.xlu2 %v2352_v4 }
 0x9c8   : > { %v2351_v11 = vpop.xlane.xlu0 %2350 }
 0x9c9   : > { %v2355_v57 = vmul.f32 %v2351_v11, %v3537_v8 }
 0x9cb   : > { %v2357_v60 = vadd.f32 1e-05, %v2355_v57 }
 0x9cd   : > { %2817 = vrsqrt.f32 %v2357_v60  ;;  %vm2365_vm2 = vweird.f32 %v2357_v60 }
 0x9d0   : > { %v2354_v62 = vpop.xlane.xlu2 %2353 }
 0x9d1   : > { %v2356_v30 = vmul.f32 %v2354_v62, %v3537_v8 }
 0x9d3   : > { %v2818_v1 = vpop.eup %2817  ;;  %v2358_v3 = vadd.f32 1e-05, %v2356_v30 }
 0x9d4   : > { %v2360_v5 = vmul.f32 %v2818_v1, %v2357_v60  ;;  %vm2366_vm0 = vweird.f32 %v2818_v1 }
 0x9d5   : > { %2819 = vrsqrt.f32 %v2358_v3  ;;  %vm2367_vm3 = vmor %vm2365_vm2, %vm2366_vm0  ;;  %vm2375_vm5 = vweird.f32 %v2358_v3 }
 0x9d6   : > { %v2361_v7 = vmul.f32 %v2818_v1, %v2360_v5 }
 0x9d8   : > { %v2362_v25 = vmul.f32 0.5, %v2361_v7 }
 0x9da   : > { %v2363_v9 = vsub.f32 1.5, %v2362_v25 }
 0x9db   : > { %v2820_v10 = vpop.eup %2819 }
 0x9dc   : > { %v2364_v12 = vmul.f32 %v2818_v1, %v2363_v9  ;;  %v2370_v50 = vmul.f32 %v2820_v10, %v2358_v3  ;;  %vm2376_vm4 = vweird.f32 %v2820_v10 }
 0x9dd   : > { %vm2377_vm6 = vmor %vm2375_vm5, %vm2376_vm4 }
 0x9de   : > { %v2368_v8 = vsel %vm2367_vm3, %v2818_v1, %v2364_v12  ;;  %v2371_v14 = vmul.f32 %v2820_v10, %v2370_v50 }
 0x9df   : > { %v2379_v45 = vmul.f32 %v2368_v8, %v2345_v47 }
 0x9e0   : > { %v2372_v39 = vmul.f32 0.5, %v2371_v14 }
 0x9e1   : > { %v2385_v58 = vmul.f32 %v2777_v13, %v2379_v45 }
 0x9e2   : > { %v2373_v18 = vsub.f32 1.5, %v2372_v39 }
 0x9e3   : > { %v2391_v48 = vadd.f32 %v2778_v16, %v2385_v58 }
 0x9e4   : > { %v2374_v6 = vmul.f32 %v2820_v10, %v2373_v18 }
 0x9e5   : > { %2393 = vst.msk [vmem:[#allocation2] sm:$0xff] %vm681_vm1, %v2391_v48 }
 0x9e6   : > { %v2378_v15 = vsel %vm2377_vm6, %v2820_v10, %v2374_v6 }
 0x9e7   : > { %v2380_v22 = vmul.f32 %v2378_v15, %v2346_v53 }
 0x9e9   : > { %v2386_v61 = vmul.f32 %v2777_v13, %v2380_v22  ;;  %2398 = sbr.rel (%p2662_p6) target bundleno = 2550 (0x9f6), region = 80 }
 0x9eb   : > { %v2392_v23 = vadd.f32 %v2778_v16, %v2386_v61 }
 0x9ed   : > { %2394 = vst.msk [vmem:[#allocation2 + $0x8] sm:$0xff] %vm681_vm1, %v2392_v23 }
 0x9ee   : > { %v2399_v24 = vld [vmem:[#allocation2] sm:$0xff] }
 0x9ef   : > { %2401 = vst.msk [vmem:[%s3645_s2] sm:$0xff] %vm681_vm1, %v2399_v24 }
 0x9f4   : > { %v2400_v19 = vld [vmem:[#allocation2 + $0x8] sm:$0xff] }
 0x9f5   : > { %2402 = vst.msk [vmem:[%s3645_s2 + $0x8] sm:$0xff] %vm681_vm1, %v2400_v19 }
 0x9f6 PF: > { %s3646_s21 = sld [smem:[#allocation4_spill]] }
 0x9f7   : > { %s3647_s25 = sld [smem:[#allocation3_spill]] }
 0x9f8   : > { %s3648_s26 = sld [smem:[#allocation5_spill]] }
 0x9fc   : > { %s23_s27 = sadd.s32 1, %s3646_s21  }
 0x9fd   : > { %p20_p7 = scmp.ge.s32.totalorder %s23_s27, 4  }
 0x9ff   :  { %22 = sbr.rel (!%p20_p7) target bundleno = 6 (0x6), region = 146 }

</bundles_post_ra>
